<compile_context>
chip_gen: v7x
topology: tpu7x:2x2x1
jax: 0.10.0
libtpu: 0.0.40
codegen_flags: <defaults>
</compile_context>

<pallas_src>
import functools
import math

import jax
import jax.numpy as jnp
from jax.experimental import pallas as pl
from jax.experimental.pallas import tpu as pltpu


# ---------------------------------------------------------------------------
# fused whole-model kernel
# ---------------------------------------------------------------------------
def _fused_forward_kernel(B, S, nhead,
                          x_ref, pw_ref, pb_ref, pe_ref,
                          wqkv_ref, bqkv_ref, wo_ref, bo_ref, ln_ref,
                          w1_ref, b1_ref, w2_ref, b2_ref,
                          hw1_ref, hb1_ref, hw2_ref, hb2_ref,
                          hw3_ref, hb3_ref,
                          o_ref):
    N, _ = x_ref.shape
    L, D, _ = wo_ref.shape
    dh = D // nhead
    f32 = jnp.float32
    bf16 = jnp.bfloat16

    # ---- input projection + positional encoding (x / pw already bf16) ------
    h2d = (jnp.dot(x_ref[...], pw_ref[...], preferred_element_type=f32)
           + pb_ref[...] + pe_ref[...])                          # (N, D) f32

    # ---- causal additive mask built in-kernel (no HBM operand) -------------
    row = jax.lax.broadcasted_iota(jnp.int32, (S, S), 0)         # query index
    col = jax.lax.broadcasted_iota(jnp.int32, (S, S), 1)         # key index
    mask_add = jnp.where(col <= row, 0.0, -1e30).astype(f32)     # (S, S)

    def layer_norm(v, g, b):
        mu = jnp.mean(v, axis=-1, keepdims=True)
        var = jnp.mean((v - mu) ** 2, axis=-1, keepdims=True)
        return (v - mu) * jax.lax.rsqrt(var + 1e-5) * g + b

    # ---- transformer encoder layers (static unroll, L is small) ------------
    # TODO(synk): convert to a layer grid / lax.fori_loop if num_layers grows.
    for l in range(L):
        wqkv = wqkv_ref[l]                    # (D, 3D) bf16, wq pre-scaled
        wo = wo_ref[l]                        # (D, D)  bf16
        ln_l = ln_ref[l]                      # (4, D)  f32

        # fused QKV projection on the flattened batch; single bf16 cast
        qkv = (jnp.dot(h2d.astype(bf16), wqkv, preferred_element_type=f32)
               + bqkv_ref[l])                                    # (N, 3D) f32
        qkv = qkv.reshape(B, S, 3 * D).astype(bf16)

        # per-head attention (batched over B); contexts concatenated so the
        # output projection is ONE (N, D) @ (D, D) matmul with the full wo.
        ctx_heads = []
        for hh in range(nhead):
            qh = qkv[:, :, hh * dh:(hh + 1) * dh]                # (B, S, dh)
            kh = qkv[:, :, D + hh * dh:D + (hh + 1) * dh]
            vh = qkv[:, :, 2 * D + hh * dh:2 * D + (hh + 1) * dh]

            s = jnp.einsum("bqd,bkd->bqk", qh, kh,
                           preferred_element_type=f32)           # (B, S, S)
            s = s + mask_add[None, :, :]
            m = jnp.max(s, axis=-1, keepdims=True)
            p = jnp.exp(s - m)
            inv = pl.reciprocal(jnp.sum(p, axis=-1, keepdims=True),
                                approx=True)
            p = (p * inv).astype(bf16)                           # (B, S, S)
            ctx_heads.append(jnp.einsum("bqk,bkd->bqd", p, vh,
                                        preferred_element_type=f32))

        ctx = jnp.concatenate(ctx_heads, axis=-1).reshape(N, D)  # (N, D) f32
        attn_out = (jnp.dot(ctx.astype(bf16), wo, preferred_element_type=f32)
                    + bo_ref[l])                                 # (N, D)

        # residual + LayerNorm 1
        y = layer_norm(h2d + attn_out, ln_l[0:1, :], ln_l[1:2, :])

        # feed-forward (ReLU) + residual + LayerNorm 2
        hid = jnp.maximum(
            jnp.dot(y.astype(bf16), w1_ref[l], preferred_element_type=f32)
            + b1_ref[l], 0.0)
        ff = (jnp.dot(hid.astype(bf16), w2_ref[l], preferred_element_type=f32)
              + b2_ref[l])
        h2d = layer_norm(y + ff, ln_l[2:3, :], ln_l[3:4, :])

    # ---- mean pool over sequence + correlation head -------------------------
    pooled = jnp.mean(h2d.reshape(B, S, D), axis=1)              # (B, D)
    h1 = jnp.maximum(
        jnp.dot(pooled.astype(bf16), hw1_ref[...],
                preferred_element_type=f32) + hb1_ref[...], 0.0)  # (B, 128)
    h2 = jnp.maximum(
        jnp.dot(h1.astype(bf16), hw2_ref[...],
                preferred_element_type=f32) + hb2_ref[...], 0.0)  # (B, 64)
    # final (64 -> 1): multiply-reduce on the VPU (avoids a lane-width-1 matmul)
    logits = (jnp.sum(h2 * hw3_ref[...], axis=-1, keepdims=True)
              + hb3_ref[...])                                     # (B, 1)
    score = 1.0 / (1.0 + jnp.exp(-logits))                        # sigmoid

    # lane-dense store: broadcast the score across the 128-lane output slab
    o_ref[...] = jnp.broadcast_to(score, (B, 128))


# ---------------------------------------------------------------------------
# parameter init (deterministic, synthetic; kept in f32 like the nn.Module)
# ---------------------------------------------------------------------------
def init_params(key, input_dim, d_model, nhead, num_layers, dim_feedforward,
                max_len=64):
    def nrm(k, shape, scale=0.05):
        return jax.random.normal(k, shape, dtype=jnp.float32) * scale

    keys = iter(jax.random.split(key, 8 + 12 * num_layers + 8))

    params = {
        "nhead": nhead,
        "proj_w": nrm(next(keys), (input_dim, d_model)),
        "proj_b": jnp.zeros((1, d_model), jnp.float32),
    }

    # sinusoidal positional encoding table (max_len, d_model)
    position = jnp.arange(max_len, dtype=jnp.float32)[:, None]
    div_term = jnp.exp(jnp.arange(0, d_model, 2, dtype=jnp.float32)
                       * (-math.log(10000.0) / d_model))
    pe = jnp.zeros((max_len, d_model), jnp.float32)
    pe = pe.at[:, 0::2].set(jnp.sin(position * div_term))
    pe = pe.at[:, 1::2].set(jnp.cos(position * div_term))
    params["pe"] = pe

    layers = []
    for _ in range(num_layers):
        lp = {
            "wq": nrm(next(keys), (d_model, d_model)),
            "bq": jnp.zeros((1, d_model), jnp.float32),
            "wk": nrm(next(keys), (d_model, d_model)),
            "bk": jnp.zeros((1, d_model), jnp.float32),
            "wv": nrm(next(keys), (d_model, d_model)),
            "bv": jnp.zeros((1, d_model), jnp.float32),
            "wo": nrm(next(keys), (d_model, d_model)),
            "bo": jnp.zeros((1, d_model), jnp.float32),
            "ln1_g": jnp.ones((1, d_model), jnp.float32),
            "ln1_b": jnp.zeros((1, d_model), jnp.float32),
            "ln2_g": jnp.ones((1, d_model), jnp.float32),
            "ln2_b": jnp.zeros((1, d_model), jnp.float32),
            "w1": nrm(next(keys), (d_model, dim_feedforward)),
            "b1": jnp.zeros((1, dim_feedforward), jnp.float32),
            "w2": nrm(next(keys), (dim_feedforward, d_model)),
            "b2": jnp.zeros((1, d_model), jnp.float32),
        }
        layers.append(lp)
    params["layers"] = layers

    params["head"] = {
        "w1": jax.random.uniform(next(keys), (d_model, 128), jnp.float32,
                                 minval=-0.1, maxval=0.1),
        "b1": jnp.zeros((1, 128), jnp.float32),
        "w2": nrm(next(keys), (128, 64)),
        "b2": jnp.zeros((1, 64), jnp.float32),
        "w3": nrm(next(keys), (64, 1)),
        "b3": jnp.zeros((1, 1), jnp.float32),
    }
    return params


# ---------------------------------------------------------------------------
# forward pass: wrapper-side repacking (bf16 weights, pre-split/pre-scaled
# slabs, pre-flattened activations) + one fused pallas_call
# ---------------------------------------------------------------------------
def forward(params, x):
    B, S, In = x.shape
    D = params["proj_w"].shape[1]
    nhead = params["nhead"]
    layers = params["layers"]
    N = B * S
    dh = D // nhead
    scale = 1.0 / math.sqrt(dh)
    bf16 = jnp.bfloat16

    # pre-flattened activation + pre-tiled positional encoding (free in XLA)
    x2d = x.reshape(N, In).astype(bf16)
    pe = jnp.broadcast_to(params["pe"][:S][None, :, :], (B, S, D)).reshape(N, D)

    # attention weights: pre-split wqkv / wo, 1/sqrt(dh) folded into wq & bq,
    # matmul operands pre-cast to bf16 (biases / LN params stay f32)
    wqkv = jnp.stack(
        [jnp.concatenate([lp["wq"] * scale, lp["wk"], lp["wv"]], axis=1)
         for lp in layers]).astype(bf16)                         # (L, D, 3D)
    bqkv = jnp.stack(
        [jnp.concatenate([lp["bq"] * scale, lp["bk"], lp["bv"]], axis=1)
         for lp in layers])                                      # (L, 1, 3D)
    wo = jnp.stack([lp["wo"] for lp in layers]).astype(bf16)     # (L, D, D)
    bo = jnp.stack([lp["bo"] for lp in layers])                  # (L, 1, D)
    # lane-dense LN packing: (L, 4, D) = [ln1_g, ln1_b, ln2_g, ln2_b]
    ln = jnp.stack(
        [jnp.concatenate([lp["ln1_g"], lp["ln1_b"],
                          lp["ln2_g"], lp["ln2_b"]], axis=0) for lp in layers])
    w1 = jnp.stack([lp["w1"] for lp in layers]).astype(bf16)     # (L, D, FF)
    b1 = jnp.stack([lp["b1"] for lp in layers])                  # (L, 1, FF)
    w2 = jnp.stack([lp["w2"] for lp in layers]).astype(bf16)     # (L, FF, D)
    b2 = jnp.stack([lp["b2"] for lp in layers])                  # (L, 1, D)

    hd = params["head"]
    hw1 = hd["w1"].astype(bf16)                                  # (D, 128)
    hw2 = hd["w2"].astype(bf16)                                  # (128, 64)
    hw3 = hd["w3"].T                                             # (1, 64) f32

    args = (x2d, params["proj_w"].astype(bf16), params["proj_b"], pe,
            wqkv, bqkv, wo, bo, ln, w1, b1, w2, b2,
            hw1, hd["b1"], hw2, hd["b2"], hw3, hd["b3"])

    # scoped VMEM sized to the actual operand footprint (with headroom),
    # capped at the smallest physical VMEM (v7x: 64 MiB)
    operand_bytes = sum(int(a.size) * a.dtype.itemsize for a in args) \
        + B * 128 * 4
    vmem_limit = int(min(64 * 1024 * 1024,
                         max(16 * 1024 * 1024, 4 * operand_bytes)))

    vmem_spec = pl.BlockSpec(memory_space=pltpu.MemorySpace.VMEM)
    out = pl.pallas_call(
        functools.partial(_fused_forward_kernel, B, S, nhead),
        in_specs=[vmem_spec] * len(args),
        out_specs=vmem_spec,
        out_shape=jax.ShapeDtypeStruct((B, 128), jnp.float32),
        compiler_params=pltpu.CompilerParams(vmem_limit_bytes=vmem_limit),
    )(*args)
    return out[:, :1]


# ---------------------------------------------------------------------------
if __name__ == "__main__":
    INPUT_DIM = 16
    D_MODEL = 32
    NHEAD = 4
    NUM_LAYERS = 2
    DIM_FF = 64
    B, S = 2, 8

    key = jax.random.PRNGKey(0)
    k_params, k_x = jax.random.split(key)
    params = init_params(k_params, INPUT_DIM, D_MODEL, NHEAD, NUM_LAYERS,
                         DIM_FF, max_len=64)
    x = jax.random.normal(k_x, (B, S, INPUT_DIM), dtype=jnp.float32)

    scores = forward(params, x)
    jax.block_until_ready(scores)
    assert scores.shape == (B, 1)
    assert bool(jnp.all(jnp.isfinite(scores)))
    assert bool(jnp.all((scores >= 0.0) & (scores <= 1.0)))
    print("KERNEL_OK")
</pallas_src>

<mosaic_0001>
module attributes {stable_mosaic.version = 11 : i64} {
  func.func @_fused_forward_kernel(%arg0: memref<16x16xbf16, #tpu.memory_space<vmem>>, %arg1: memref<16x32xbf16, #tpu.memory_space<vmem>>, %arg2: memref<1x32xf32, #tpu.memory_space<vmem>>, %arg3: memref<16x32xf32, #tpu.memory_space<vmem>>, %arg4: memref<2x32x96xbf16, #tpu.memory_space<vmem>>, %arg5: memref<2x1x96xf32, #tpu.memory_space<vmem>>, %arg6: memref<2x32x32xbf16, #tpu.memory_space<vmem>>, %arg7: memref<2x1x32xf32, #tpu.memory_space<vmem>>, %arg8: memref<2x4x32xf32, #tpu.memory_space<vmem>>, %arg9: memref<2x32x64xbf16, #tpu.memory_space<vmem>>, %arg10: memref<2x1x64xf32, #tpu.memory_space<vmem>>, %arg11: memref<2x64x32xbf16, #tpu.memory_space<vmem>>, %arg12: memref<2x1x32xf32, #tpu.memory_space<vmem>>, %arg13: memref<32x128xbf16, #tpu.memory_space<vmem>>, %arg14: memref<1x128xf32, #tpu.memory_space<vmem>>, %arg15: memref<128x64xbf16, #tpu.memory_space<vmem>>, %arg16: memref<1x64xf32, #tpu.memory_space<vmem>>, %arg17: memref<1x64xf32, #tpu.memory_space<vmem>>, %arg18: memref<1x1xf32, #tpu.memory_space<vmem>>, %arg19: memref<2x128xf32, #tpu.memory_space<vmem>>) attributes {dimension_semantics = [], scalar_prefetch = 0 : i64, scratch_operands = 0 : i64, tpu.core_type = #tpu.core_type<tc>} {
    %c0 = arith.constant 0 : index
    %c0_0 = arith.constant 0 : index
    %0 = vector.load %arg0[%c0, %c0_0] : memref<16x16xbf16, #tpu.memory_space<vmem>>, vector<16x16xbf16>
    %c0_1 = arith.constant 0 : index
    %c0_2 = arith.constant 0 : index
    %1 = vector.load %arg1[%c0_1, %c0_2] : memref<16x32xbf16, #tpu.memory_space<vmem>>, vector<16x32xbf16>
    %cst = arith.constant dense<0.000000e+00> : vector<16x32xf32>
    %2 = tpu.matmul %0, %1, %cst {dimension_numbers = #tpu.dot_dimension_numbers<[1], [0], [0], [1], [0, 0, 1, 1], [], []>} : vector<16x16xbf16>, vector<16x32xbf16>, vector<16x32xf32> -> vector<16x32xf32>
    %c0_3 = arith.constant 0 : index
    %c0_4 = arith.constant 0 : index
    %3 = vector.load %arg2[%c0_3, %c0_4] : memref<1x32xf32, #tpu.memory_space<vmem>>, vector<1x32xf32>
    %4 = vector.broadcast %3 : vector<1x32xf32> to vector<16x32xf32>
    %5 = arith.addf %2, %4 : vector<16x32xf32>
    %c0_5 = arith.constant 0 : index
    %c0_6 = arith.constant 0 : index
    %6 = vector.load %arg3[%c0_5, %c0_6] : memref<16x32xf32, #tpu.memory_space<vmem>>, vector<16x32xf32>
    %7 = arith.addf %5, %6 : vector<16x32xf32>
    %8 = tpu.iota {dimensions = array<i32: 0>} : vector<8x8xi32>
    %9 = tpu.iota {dimensions = array<i32: 1>} : vector<8x8xi32>
    %10 = arith.cmpi sle, %9, %8 : vector<8x8xi32>
    %cst_7 = arith.constant 0.000000e+00 : f32
    %cst_8 = arith.constant -1.000000e+30 : f32
    %11 = vector.broadcast %cst_7 : f32 to vector<8x8xf32>
    %12 = vector.broadcast %cst_8 : f32 to vector<8x8xf32>
    %13 = arith.select %10, %11, %12 : vector<8x8xi1>, vector<8x8xf32>
    %c0_9 = arith.constant 0 : index
    %c0_10 = arith.constant 0 : index
    %c0_11 = arith.constant 0 : index
    %14 = vector.load %arg4[%c0_9, %c0_10, %c0_11] : memref<2x32x96xbf16, #tpu.memory_space<vmem>>, vector<1x32x96xbf16>
    %15 = vector.shape_cast %14 : vector<1x32x96xbf16> to vector<32x96xbf16>
    %c0_12 = arith.constant 0 : index
    %c0_13 = arith.constant 0 : index
    %c0_14 = arith.constant 0 : index
    %16 = vector.load %arg6[%c0_12, %c0_13, %c0_14] : memref<2x32x32xbf16, #tpu.memory_space<vmem>>, vector<1x32x32xbf16>
    %17 = vector.shape_cast %16 : vector<1x32x32xbf16> to vector<32x32xbf16>
    %c0_15 = arith.constant 0 : index
    %c0_16 = arith.constant 0 : index
    %c0_17 = arith.constant 0 : index
    %18 = vector.load %arg8[%c0_15, %c0_16, %c0_17] : memref<2x4x32xf32, #tpu.memory_space<vmem>>, vector<1x4x32xf32>
    %19 = vector.shape_cast %18 : vector<1x4x32xf32> to vector<4x32xf32>
    %20 = arith.truncf %7 : vector<16x32xf32> to vector<16x32xbf16>
    %cst_18 = arith.constant dense<0.000000e+00> : vector<16x96xf32>
    %21 = tpu.matmul %20, %15, %cst_18 {dimension_numbers = #tpu.dot_dimension_numbers<[1], [0], [0], [1], [0, 0, 1, 1], [], []>} : vector<16x32xbf16>, vector<32x96xbf16>, vector<16x96xf32> -> vector<16x96xf32>
    %c0_19 = arith.constant 0 : index
    %c0_20 = arith.constant 0 : index
    %c0_21 = arith.constant 0 : index
    %22 = vector.load %arg5[%c0_19, %c0_20, %c0_21] : memref<2x1x96xf32, #tpu.memory_space<vmem>>, vector<1x1x96xf32>
    %23 = vector.shape_cast %22 : vector<1x1x96xf32> to vector<1x96xf32>
    %24 = vector.broadcast %23 : vector<1x96xf32> to vector<16x96xf32>
    %25 = arith.addf %21, %24 : vector<16x96xf32>
    %26 = vector.shape_cast %25 : vector<16x96xf32> to vector<2x8x96xf32>
    %27 = arith.truncf %26 : vector<2x8x96xf32> to vector<2x8x96xbf16>
    %28 = vector.extract_strided_slice %27 {offsets = [0, 0, 0], sizes = [2, 8, 8], strides = [1, 1, 1]} : vector<2x8x96xbf16> to vector<2x8x8xbf16>
    %29 = vector.extract_strided_slice %27 {offsets = [0, 0, 32], sizes = [2, 8, 8], strides = [1, 1, 1]} : vector<2x8x96xbf16> to vector<2x8x8xbf16>
    %30 = vector.extract_strided_slice %27 {offsets = [0, 0, 64], sizes = [2, 8, 8], strides = [1, 1, 1]} : vector<2x8x96xbf16> to vector<2x8x8xbf16>
    "tpu.trace_start"() <{level = 10 : i32, message = "bqd,bkd->bqk"}> : () -> ()
    %cst_22 = arith.constant dense<0.000000e+00> : vector<2x8x8xf32>
    %31 = tpu.matmul %28, %29, %cst_22 {dimension_numbers = #tpu.dot_dimension_numbers<[2], [2], [1], [1], [0, 0, 0, 1, 1, 1], [0], [0]>} : vector<2x8x8xbf16>, vector<2x8x8xbf16>, vector<2x8x8xf32> -> vector<2x8x8xf32>
    "tpu.trace_stop"() : () -> ()
    %32 = vector.shape_cast %13 : vector<8x8xf32> to vector<1x8x8xf32>
    %33 = vector.broadcast %32 : vector<1x8x8xf32> to vector<2x8x8xf32>
    %34 = arith.addf %31, %33 : vector<2x8x8xf32>
    %cst_23 = arith.constant dense<0xFF800000> : vector<2x8xf32>
    %35 = vector.multi_reduction <maximumf>, %34, %cst_23 [2] : vector<2x8x8xf32> to vector<2x8xf32>
    %36 = vector.shape_cast %35 : vector<2x8xf32> to vector<2x8x1xf32>
    %37 = vector.broadcast %36 : vector<2x8x1xf32> to vector<2x8x8xf32>
    %38 = arith.subf %34, %37 : vector<2x8x8xf32>
    %39 = math.exp %38 : vector<2x8x8xf32>
    %cst_24 = arith.constant dense<0.000000e+00> : vector<2x8xf32>
    %40 = vector.multi_reduction <add>, %39, %cst_24 [2] : vector<2x8x8xf32> to vector<2x8xf32>
    %41 = vector.shape_cast %40 : vector<2x8xf32> to vector<2x8x1xf32>
    %42 = tpu.reciprocal %41 {approx = true} : vector<2x8x1xf32> -> vector<2x8x1xf32>
    %43 = vector.broadcast %42 : vector<2x8x1xf32> to vector<2x8x8xf32>
    %44 = arith.mulf %39, %43 : vector<2x8x8xf32>
    %45 = arith.truncf %44 : vector<2x8x8xf32> to vector<2x8x8xbf16>
    "tpu.trace_start"() <{level = 10 : i32, message = "bqk,bkd->bqd"}> : () -> ()
    %cst_25 = arith.constant dense<0.000000e+00> : vector<2x8x8xf32>
    %46 = tpu.matmul %45, %30, %cst_25 {dimension_numbers = #tpu.dot_dimension_numbers<[2], [1], [1], [2], [0, 0, 0, 1, 1, 2], [0], [0]>} : vector<2x8x8xbf16>, vector<2x8x8xbf16>, vector<2x8x8xf32> -> vector<2x8x8xf32>
    "tpu.trace_stop"() : () -> ()
    %47 = vector.extract_strided_slice %27 {offsets = [0, 0, 8], sizes = [2, 8, 8], strides = [1, 1, 1]} : vector<2x8x96xbf16> to vector<2x8x8xbf16>
    %48 = vector.extract_strided_slice %27 {offsets = [0, 0, 40], sizes = [2, 8, 8], strides = [1, 1, 1]} : vector<2x8x96xbf16> to vector<2x8x8xbf16>
    %49 = vector.extract_strided_slice %27 {offsets = [0, 0, 72], sizes = [2, 8, 8], strides = [1, 1, 1]} : vector<2x8x96xbf16> to vector<2x8x8xbf16>
    "tpu.trace_start"() <{level = 10 : i32, message = "bqd,bkd->bqk"}> : () -> ()
    %cst_26 = arith.constant dense<0.000000e+00> : vector<2x8x8xf32>
    %50 = tpu.matmul %47, %48, %cst_26 {dimension_numbers = #tpu.dot_dimension_numbers<[2], [2], [1], [1], [0, 0, 0, 1, 1, 1], [0], [0]>} : vector<2x8x8xbf16>, vector<2x8x8xbf16>, vector<2x8x8xf32> -> vector<2x8x8xf32>
    "tpu.trace_stop"() : () -> ()
    %51 = vector.shape_cast %13 : vector<8x8xf32> to vector<1x8x8xf32>
    %52 = vector.broadcast %51 : vector<1x8x8xf32> to vector<2x8x8xf32>
    %53 = arith.addf %50, %52 : vector<2x8x8xf32>
    %cst_27 = arith.constant dense<0xFF800000> : vector<2x8xf32>
    %54 = vector.multi_reduction <maximumf>, %53, %cst_27 [2] : vector<2x8x8xf32> to vector<2x8xf32>
    %55 = vector.shape_cast %54 : vector<2x8xf32> to vector<2x8x1xf32>
    %56 = vector.broadcast %55 : vector<2x8x1xf32> to vector<2x8x8xf32>
    %57 = arith.subf %53, %56 : vector<2x8x8xf32>
    %58 = math.exp %57 : vector<2x8x8xf32>
    %cst_28 = arith.constant dense<0.000000e+00> : vector<2x8xf32>
    %59 = vector.multi_reduction <add>, %58, %cst_28 [2] : vector<2x8x8xf32> to vector<2x8xf32>
    %60 = vector.shape_cast %59 : vector<2x8xf32> to vector<2x8x1xf32>
    %61 = tpu.reciprocal %60 {approx = true} : vector<2x8x1xf32> -> vector<2x8x1xf32>
    %62 = vector.broadcast %61 : vector<2x8x1xf32> to vector<2x8x8xf32>
    %63 = arith.mulf %58, %62 : vector<2x8x8xf32>
    %64 = arith.truncf %63 : vector<2x8x8xf32> to vector<2x8x8xbf16>
    "tpu.trace_start"() <{level = 10 : i32, message = "bqk,bkd->bqd"}> : () -> ()
    %cst_29 = arith.constant dense<0.000000e+00> : vector<2x8x8xf32>
    %65 = tpu.matmul %64, %49, %cst_29 {dimension_numbers = #tpu.dot_dimension_numbers<[2], [1], [1], [2], [0, 0, 0, 1, 1, 2], [0], [0]>} : vector<2x8x8xbf16>, vector<2x8x8xbf16>, vector<2x8x8xf32> -> vector<2x8x8xf32>
    "tpu.trace_stop"() : () -> ()
    %66 = vector.extract_strided_slice %27 {offsets = [0, 0, 16], sizes = [2, 8, 8], strides = [1, 1, 1]} : vector<2x8x96xbf16> to vector<2x8x8xbf16>
    %67 = vector.extract_strided_slice %27 {offsets = [0, 0, 48], sizes = [2, 8, 8], strides = [1, 1, 1]} : vector<2x8x96xbf16> to vector<2x8x8xbf16>
    %68 = vector.extract_strided_slice %27 {offsets = [0, 0, 80], sizes = [2, 8, 8], strides = [1, 1, 1]} : vector<2x8x96xbf16> to vector<2x8x8xbf16>
    "tpu.trace_start"() <{level = 10 : i32, message = "bqd,bkd->bqk"}> : () -> ()
    %cst_30 = arith.constant dense<0.000000e+00> : vector<2x8x8xf32>
    %69 = tpu.matmul %66, %67, %cst_30 {dimension_numbers = #tpu.dot_dimension_numbers<[2], [2], [1], [1], [0, 0, 0, 1, 1, 1], [0], [0]>} : vector<2x8x8xbf16>, vector<2x8x8xbf16>, vector<2x8x8xf32> -> vector<2x8x8xf32>
    "tpu.trace_stop"() : () -> ()
    %70 = vector.shape_cast %13 : vector<8x8xf32> to vector<1x8x8xf32>
    %71 = vector.broadcast %70 : vector<1x8x8xf32> to vector<2x8x8xf32>
    %72 = arith.addf %69, %71 : vector<2x8x8xf32>
    %cst_31 = arith.constant dense<0xFF800000> : vector<2x8xf32>
    %73 = vector.multi_reduction <maximumf>, %72, %cst_31 [2] : vector<2x8x8xf32> to vector<2x8xf32>
    %74 = vector.shape_cast %73 : vector<2x8xf32> to vector<2x8x1xf32>
    %75 = vector.broadcast %74 : vector<2x8x1xf32> to vector<2x8x8xf32>
    %76 = arith.subf %72, %75 : vector<2x8x8xf32>
    %77 = math.exp %76 : vector<2x8x8xf32>
    %cst_32 = arith.constant dense<0.000000e+00> : vector<2x8xf32>
    %78 = vector.multi_reduction <add>, %77, %cst_32 [2] : vector<2x8x8xf32> to vector<2x8xf32>
    %79 = vector.shape_cast %78 : vector<2x8xf32> to vector<2x8x1xf32>
    %80 = tpu.reciprocal %79 {approx = true} : vector<2x8x1xf32> -> vector<2x8x1xf32>
    %81 = vector.broadcast %80 : vector<2x8x1xf32> to vector<2x8x8xf32>
    %82 = arith.mulf %77, %81 : vector<2x8x8xf32>
    %83 = arith.truncf %82 : vector<2x8x8xf32> to vector<2x8x8xbf16>
    "tpu.trace_start"() <{level = 10 : i32, message = "bqk,bkd->bqd"}> : () -> ()
    %cst_33 = arith.constant dense<0.000000e+00> : vector<2x8x8xf32>
    %84 = tpu.matmul %83, %68, %cst_33 {dimension_numbers = #tpu.dot_dimension_numbers<[2], [1], [1], [2], [0, 0, 0, 1, 1, 2], [0], [0]>} : vector<2x8x8xbf16>, vector<2x8x8xbf16>, vector<2x8x8xf32> -> vector<2x8x8xf32>
    "tpu.trace_stop"() : () -> ()
    %85 = vector.extract_strided_slice %27 {offsets = [0, 0, 24], sizes = [2, 8, 8], strides = [1, 1, 1]} : vector<2x8x96xbf16> to vector<2x8x8xbf16>
    %86 = vector.extract_strided_slice %27 {offsets = [0, 0, 56], sizes = [2, 8, 8], strides = [1, 1, 1]} : vector<2x8x96xbf16> to vector<2x8x8xbf16>
    %87 = vector.extract_strided_slice %27 {offsets = [0, 0, 88], sizes = [2, 8, 8], strides = [1, 1, 1]} : vector<2x8x96xbf16> to vector<2x8x8xbf16>
    "tpu.trace_start"() <{level = 10 : i32, message = "bqd,bkd->bqk"}> : () -> ()
    %cst_34 = arith.constant dense<0.000000e+00> : vector<2x8x8xf32>
    %88 = tpu.matmul %85, %86, %cst_34 {dimension_numbers = #tpu.dot_dimension_numbers<[2], [2], [1], [1], [0, 0, 0, 1, 1, 1], [0], [0]>} : vector<2x8x8xbf16>, vector<2x8x8xbf16>, vector<2x8x8xf32> -> vector<2x8x8xf32>
    "tpu.trace_stop"() : () -> ()
    %89 = vector.shape_cast %13 : vector<8x8xf32> to vector<1x8x8xf32>
    %90 = vector.broadcast %89 : vector<1x8x8xf32> to vector<2x8x8xf32>
    %91 = arith.addf %88, %90 : vector<2x8x8xf32>
    %cst_35 = arith.constant dense<0xFF800000> : vector<2x8xf32>
    %92 = vector.multi_reduction <maximumf>, %91, %cst_35 [2] : vector<2x8x8xf32> to vector<2x8xf32>
    %93 = vector.shape_cast %92 : vector<2x8xf32> to vector<2x8x1xf32>
    %94 = vector.broadcast %93 : vector<2x8x1xf32> to vector<2x8x8xf32>
    %95 = arith.subf %91, %94 : vector<2x8x8xf32>
    %96 = math.exp %95 : vector<2x8x8xf32>
    %cst_36 = arith.constant dense<0.000000e+00> : vector<2x8xf32>
    %97 = vector.multi_reduction <add>, %96, %cst_36 [2] : vector<2x8x8xf32> to vector<2x8xf32>
    %98 = vector.shape_cast %97 : vector<2x8xf32> to vector<2x8x1xf32>
    %99 = tpu.reciprocal %98 {approx = true} : vector<2x8x1xf32> -> vector<2x8x1xf32>
    %100 = vector.broadcast %99 : vector<2x8x1xf32> to vector<2x8x8xf32>
    %101 = arith.mulf %96, %100 : vector<2x8x8xf32>
    %102 = arith.truncf %101 : vector<2x8x8xf32> to vector<2x8x8xbf16>
    "tpu.trace_start"() <{level = 10 : i32, message = "bqk,bkd->bqd"}> : () -> ()
    %cst_37 = arith.constant dense<0.000000e+00> : vector<2x8x8xf32>
    %103 = tpu.matmul %102, %87, %cst_37 {dimension_numbers = #tpu.dot_dimension_numbers<[2], [1], [1], [2], [0, 0, 0, 1, 1, 2], [0], [0]>} : vector<2x8x8xbf16>, vector<2x8x8xbf16>, vector<2x8x8xf32> -> vector<2x8x8xf32>
    "tpu.trace_stop"() : () -> ()
    %104 = tpu.concatenate %46, %65, %84, %103 in 2 : vector<2x8x8xf32>, vector<2x8x8xf32>, vector<2x8x8xf32>, vector<2x8x8xf32> -> vector<2x8x32xf32>
    %105 = vector.shape_cast %104 : vector<2x8x32xf32> to vector<16x32xf32>
    %106 = arith.truncf %105 : vector<16x32xf32> to vector<16x32xbf16>
    %cst_38 = arith.constant dense<0.000000e+00> : vector<16x32xf32>
    %107 = tpu.matmul %106, %17, %cst_38 {dimension_numbers = #tpu.dot_dimension_numbers<[1], [0], [0], [1], [0, 0, 1, 1], [], []>} : vector<16x32xbf16>, vector<32x32xbf16>, vector<16x32xf32> -> vector<16x32xf32>
    %c0_39 = arith.constant 0 : index
    %c0_40 = arith.constant 0 : index
    %c0_41 = arith.constant 0 : index
    %108 = vector.load %arg7[%c0_39, %c0_40, %c0_41] : memref<2x1x32xf32, #tpu.memory_space<vmem>>, vector<1x1x32xf32>
    %109 = vector.shape_cast %108 : vector<1x1x32xf32> to vector<1x32xf32>
    %110 = vector.broadcast %109 : vector<1x32xf32> to vector<16x32xf32>
    %111 = arith.addf %107, %110 : vector<16x32xf32>
    %112 = arith.addf %7, %111 : vector<16x32xf32>
    %113 = vector.extract_strided_slice %19 {offsets = [0, 0], sizes = [1, 32], strides = [1, 1]} : vector<4x32xf32> to vector<1x32xf32>
    %114 = vector.extract_strided_slice %19 {offsets = [1, 0], sizes = [1, 32], strides = [1, 1]} : vector<4x32xf32> to vector<1x32xf32>
    %cst_42 = arith.constant dense<0.000000e+00> : vector<16xf32>
    %115 = vector.multi_reduction <add>, %112, %cst_42 [1] : vector<16x32xf32> to vector<16xf32>
    %116 = vector.shape_cast %115 : vector<16xf32> to vector<16x1xf32>
    %cst_43 = arith.constant 3.200000e+01 : f32
    %117 = vector.broadcast %cst_43 : f32 to vector<16x1xf32>
    %118 = arith.divf %116, %117 : vector<16x1xf32>
    %119 = vector.broadcast %118 : vector<16x1xf32> to vector<16x32xf32>
    %120 = arith.subf %112, %119 : vector<16x32xf32>
    %121 = arith.mulf %120, %120 : vector<16x32xf32>
    %cst_44 = arith.constant dense<0.000000e+00> : vector<16xf32>
    %122 = vector.multi_reduction <add>, %121, %cst_44 [1] : vector<16x32xf32> to vector<16xf32>
    %123 = vector.shape_cast %122 : vector<16xf32> to vector<16x1xf32>
    %cst_45 = arith.constant 3.200000e+01 : f32
    %124 = vector.broadcast %cst_45 : f32 to vector<16x1xf32>
    %125 = arith.divf %123, %124 : vector<16x1xf32>
    %126 = vector.broadcast %118 : vector<16x1xf32> to vector<16x32xf32>
    %127 = arith.subf %112, %126 : vector<16x32xf32>
    %cst_46 = arith.constant 9.99999974E-6 : f32
    %128 = vector.broadcast %cst_46 : f32 to vector<16x1xf32>
    %129 = arith.addf %125, %128 : vector<16x1xf32>
    %130 = math.rsqrt %129 : vector<16x1xf32>
    %131 = vector.broadcast %130 : vector<16x1xf32> to vector<16x32xf32>
    %132 = arith.mulf %127, %131 : vector<16x32xf32>
    %133 = vector.broadcast %113 : vector<1x32xf32> to vector<16x32xf32>
    %134 = arith.mulf %132, %133 : vector<16x32xf32>
    %135 = vector.broadcast %114 : vector<1x32xf32> to vector<16x32xf32>
    %136 = arith.addf %134, %135 : vector<16x32xf32>
    %137 = arith.truncf %136 : vector<16x32xf32> to vector<16x32xbf16>
    %c0_47 = arith.constant 0 : index
    %c0_48 = arith.constant 0 : index
    %c0_49 = arith.constant 0 : index
    %138 = vector.load %arg9[%c0_47, %c0_48, %c0_49] : memref<2x32x64xbf16, #tpu.memory_space<vmem>>, vector<1x32x64xbf16>
    %139 = vector.shape_cast %138 : vector<1x32x64xbf16> to vector<32x64xbf16>
    %cst_50 = arith.constant dense<0.000000e+00> : vector<16x64xf32>
    %140 = tpu.matmul %137, %139, %cst_50 {dimension_numbers = #tpu.dot_dimension_numbers<[1], [0], [0], [1], [0, 0, 1, 1], [], []>} : vector<16x32xbf16>, vector<32x64xbf16>, vector<16x64xf32> -> vector<16x64xf32>
    %c0_51 = arith.constant 0 : index
    %c0_52 = arith.constant 0 : index
    %c0_53 = arith.constant 0 : index
    %141 = vector.load %arg10[%c0_51, %c0_52, %c0_53] : memref<2x1x64xf32, #tpu.memory_space<vmem>>, vector<1x1x64xf32>
    %142 = vector.shape_cast %141 : vector<1x1x64xf32> to vector<1x64xf32>
    %143 = vector.broadcast %142 : vector<1x64xf32> to vector<16x64xf32>
    %144 = arith.addf %140, %143 : vector<16x64xf32>
    %cst_54 = arith.constant 0.000000e+00 : f32
    %145 = vector.broadcast %cst_54 : f32 to vector<16x64xf32>
    %146 = arith.maximumf %144, %145 : vector<16x64xf32>
    %147 = arith.truncf %146 : vector<16x64xf32> to vector<16x64xbf16>
    %c0_55 = arith.constant 0 : index
    %c0_56 = arith.constant 0 : index
    %c0_57 = arith.constant 0 : index
    %148 = vector.load %arg11[%c0_55, %c0_56, %c0_57] : memref<2x64x32xbf16, #tpu.memory_space<vmem>>, vector<1x64x32xbf16>
    %149 = vector.shape_cast %148 : vector<1x64x32xbf16> to vector<64x32xbf16>
    %cst_58 = arith.constant dense<0.000000e+00> : vector<16x32xf32>
    %150 = tpu.matmul %147, %149, %cst_58 {dimension_numbers = #tpu.dot_dimension_numbers<[1], [0], [0], [1], [0, 0, 1, 1], [], []>} : vector<16x64xbf16>, vector<64x32xbf16>, vector<16x32xf32> -> vector<16x32xf32>
    %c0_59 = arith.constant 0 : index
    %c0_60 = arith.constant 0 : index
    %c0_61 = arith.constant 0 : index
    %151 = vector.load %arg12[%c0_59, %c0_60, %c0_61] : memref<2x1x32xf32, #tpu.memory_space<vmem>>, vector<1x1x32xf32>
    %152 = vector.shape_cast %151 : vector<1x1x32xf32> to vector<1x32xf32>
    %153 = vector.broadcast %152 : vector<1x32xf32> to vector<16x32xf32>
    %154 = arith.addf %150, %153 : vector<16x32xf32>
    %155 = arith.addf %136, %154 : vector<16x32xf32>
    %156 = vector.extract_strided_slice %19 {offsets = [2, 0], sizes = [1, 32], strides = [1, 1]} : vector<4x32xf32> to vector<1x32xf32>
    %157 = vector.extract_strided_slice %19 {offsets = [3, 0], sizes = [1, 32], strides = [1, 1]} : vector<4x32xf32> to vector<1x32xf32>
    %cst_62 = arith.constant dense<0.000000e+00> : vector<16xf32>
    %158 = vector.multi_reduction <add>, %155, %cst_62 [1] : vector<16x32xf32> to vector<16xf32>
    %159 = vector.shape_cast %158 : vector<16xf32> to vector<16x1xf32>
    %cst_63 = arith.constant 3.200000e+01 : f32
    %160 = vector.broadcast %cst_63 : f32 to vector<16x1xf32>
    %161 = arith.divf %159, %160 : vector<16x1xf32>
    %162 = vector.broadcast %161 : vector<16x1xf32> to vector<16x32xf32>
    %163 = arith.subf %155, %162 : vector<16x32xf32>
    %164 = arith.mulf %163, %163 : vector<16x32xf32>
    %cst_64 = arith.constant dense<0.000000e+00> : vector<16xf32>
    %165 = vector.multi_reduction <add>, %164, %cst_64 [1] : vector<16x32xf32> to vector<16xf32>
    %166 = vector.shape_cast %165 : vector<16xf32> to vector<16x1xf32>
    %cst_65 = arith.constant 3.200000e+01 : f32
    %167 = vector.broadcast %cst_65 : f32 to vector<16x1xf32>
    %168 = arith.divf %166, %167 : vector<16x1xf32>
    %169 = vector.broadcast %161 : vector<16x1xf32> to vector<16x32xf32>
    %170 = arith.subf %155, %169 : vector<16x32xf32>
    %cst_66 = arith.constant 9.99999974E-6 : f32
    %171 = vector.broadcast %cst_66 : f32 to vector<16x1xf32>
    %172 = arith.addf %168, %171 : vector<16x1xf32>
    %173 = math.rsqrt %172 : vector<16x1xf32>
    %174 = vector.broadcast %173 : vector<16x1xf32> to vector<16x32xf32>
    %175 = arith.mulf %170, %174 : vector<16x32xf32>
    %176 = vector.broadcast %156 : vector<1x32xf32> to vector<16x32xf32>
    %177 = arith.mulf %175, %176 : vector<16x32xf32>
    %178 = vector.broadcast %157 : vector<1x32xf32> to vector<16x32xf32>
    %179 = arith.addf %177, %178 : vector<16x32xf32>
    %c1 = arith.constant 1 : index
    %c0_67 = arith.constant 0 : index
    %c0_68 = arith.constant 0 : index
    %180 = vector.load %arg4[%c1, %c0_67, %c0_68] : memref<2x32x96xbf16, #tpu.memory_space<vmem>>, vector<1x32x96xbf16>
    %181 = vector.shape_cast %180 : vector<1x32x96xbf16> to vector<32x96xbf16>
    %c1_69 = arith.constant 1 : index
    %c0_70 = arith.constant 0 : index
    %c0_71 = arith.constant 0 : index
    %182 = vector.load %arg6[%c1_69, %c0_70, %c0_71] : memref<2x32x32xbf16, #tpu.memory_space<vmem>>, vector<1x32x32xbf16>
    %183 = vector.shape_cast %182 : vector<1x32x32xbf16> to vector<32x32xbf16>
    %c1_72 = arith.constant 1 : index
    %c0_73 = arith.constant 0 : index
    %c0_74 = arith.constant 0 : index
    %184 = vector.load %arg8[%c1_72, %c0_73, %c0_74] : memref<2x4x32xf32, #tpu.memory_space<vmem>>, vector<1x4x32xf32>
    %185 = vector.shape_cast %184 : vector<1x4x32xf32> to vector<4x32xf32>
    %186 = arith.truncf %179 : vector<16x32xf32> to vector<16x32xbf16>
    %cst_75 = arith.constant dense<0.000000e+00> : vector<16x96xf32>
    %187 = tpu.matmul %186, %181, %cst_75 {dimension_numbers = #tpu.dot_dimension_numbers<[1], [0], [0], [1], [0, 0, 1, 1], [], []>} : vector<16x32xbf16>, vector<32x96xbf16>, vector<16x96xf32> -> vector<16x96xf32>
    %c1_76 = arith.constant 1 : index
    %c0_77 = arith.constant 0 : index
    %c0_78 = arith.constant 0 : index
    %188 = vector.load %arg5[%c1_76, %c0_77, %c0_78] : memref<2x1x96xf32, #tpu.memory_space<vmem>>, vector<1x1x96xf32>
    %189 = vector.shape_cast %188 : vector<1x1x96xf32> to vector<1x96xf32>
    %190 = vector.broadcast %189 : vector<1x96xf32> to vector<16x96xf32>
    %191 = arith.addf %187, %190 : vector<16x96xf32>
    %192 = vector.shape_cast %191 : vector<16x96xf32> to vector<2x8x96xf32>
    %193 = arith.truncf %192 : vector<2x8x96xf32> to vector<2x8x96xbf16>
    %194 = vector.extract_strided_slice %193 {offsets = [0, 0, 0], sizes = [2, 8, 8], strides = [1, 1, 1]} : vector<2x8x96xbf16> to vector<2x8x8xbf16>
    %195 = vector.extract_strided_slice %193 {offsets = [0, 0, 32], sizes = [2, 8, 8], strides = [1, 1, 1]} : vector<2x8x96xbf16> to vector<2x8x8xbf16>
    %196 = vector.extract_strided_slice %193 {offsets = [0, 0, 64], sizes = [2, 8, 8], strides = [1, 1, 1]} : vector<2x8x96xbf16> to vector<2x8x8xbf16>
    "tpu.trace_start"() <{level = 10 : i32, message = "bqd,bkd->bqk"}> : () -> ()
    %cst_79 = arith.constant dense<0.000000e+00> : vector<2x8x8xf32>
    %197 = tpu.matmul %194, %195, %cst_79 {dimension_numbers = #tpu.dot_dimension_numbers<[2], [2], [1], [1], [0, 0, 0, 1, 1, 1], [0], [0]>} : vector<2x8x8xbf16>, vector<2x8x8xbf16>, vector<2x8x8xf32> -> vector<2x8x8xf32>
    "tpu.trace_stop"() : () -> ()
    %198 = vector.shape_cast %13 : vector<8x8xf32> to vector<1x8x8xf32>
    %199 = vector.broadcast %198 : vector<1x8x8xf32> to vector<2x8x8xf32>
    %200 = arith.addf %197, %199 : vector<2x8x8xf32>
    %cst_80 = arith.constant dense<0xFF800000> : vector<2x8xf32>
    %201 = vector.multi_reduction <maximumf>, %200, %cst_80 [2] : vector<2x8x8xf32> to vector<2x8xf32>
    %202 = vector.shape_cast %201 : vector<2x8xf32> to vector<2x8x1xf32>
    %203 = vector.broadcast %202 : vector<2x8x1xf32> to vector<2x8x8xf32>
    %204 = arith.subf %200, %203 : vector<2x8x8xf32>
    %205 = math.exp %204 : vector<2x8x8xf32>
    %cst_81 = arith.constant dense<0.000000e+00> : vector<2x8xf32>
    %206 = vector.multi_reduction <add>, %205, %cst_81 [2] : vector<2x8x8xf32> to vector<2x8xf32>
    %207 = vector.shape_cast %206 : vector<2x8xf32> to vector<2x8x1xf32>
    %208 = tpu.reciprocal %207 {approx = true} : vector<2x8x1xf32> -> vector<2x8x1xf32>
    %209 = vector.broadcast %208 : vector<2x8x1xf32> to vector<2x8x8xf32>
    %210 = arith.mulf %205, %209 : vector<2x8x8xf32>
    %211 = arith.truncf %210 : vector<2x8x8xf32> to vector<2x8x8xbf16>
    "tpu.trace_start"() <{level = 10 : i32, message = "bqk,bkd->bqd"}> : () -> ()
    %cst_82 = arith.constant dense<0.000000e+00> : vector<2x8x8xf32>
    %212 = tpu.matmul %211, %196, %cst_82 {dimension_numbers = #tpu.dot_dimension_numbers<[2], [1], [1], [2], [0, 0, 0, 1, 1, 2], [0], [0]>} : vector<2x8x8xbf16>, vector<2x8x8xbf16>, vector<2x8x8xf32> -> vector<2x8x8xf32>
    "tpu.trace_stop"() : () -> ()
    %213 = vector.extract_strided_slice %193 {offsets = [0, 0, 8], sizes = [2, 8, 8], strides = [1, 1, 1]} : vector<2x8x96xbf16> to vector<2x8x8xbf16>
    %214 = vector.extract_strided_slice %193 {offsets = [0, 0, 40], sizes = [2, 8, 8], strides = [1, 1, 1]} : vector<2x8x96xbf16> to vector<2x8x8xbf16>
    %215 = vector.extract_strided_slice %193 {offsets = [0, 0, 72], sizes = [2, 8, 8], strides = [1, 1, 1]} : vector<2x8x96xbf16> to vector<2x8x8xbf16>
    "tpu.trace_start"() <{level = 10 : i32, message = "bqd,bkd->bqk"}> : () -> ()
    %cst_83 = arith.constant dense<0.000000e+00> : vector<2x8x8xf32>
    %216 = tpu.matmul %213, %214, %cst_83 {dimension_numbers = #tpu.dot_dimension_numbers<[2], [2], [1], [1], [0, 0, 0, 1, 1, 1], [0], [0]>} : vector<2x8x8xbf16>, vector<2x8x8xbf16>, vector<2x8x8xf32> -> vector<2x8x8xf32>
    "tpu.trace_stop"() : () -> ()
    %217 = vector.shape_cast %13 : vector<8x8xf32> to vector<1x8x8xf32>
    %218 = vector.broadcast %217 : vector<1x8x8xf32> to vector<2x8x8xf32>
    %219 = arith.addf %216, %218 : vector<2x8x8xf32>
    %cst_84 = arith.constant dense<0xFF800000> : vector<2x8xf32>
    %220 = vector.multi_reduction <maximumf>, %219, %cst_84 [2] : vector<2x8x8xf32> to vector<2x8xf32>
    %221 = vector.shape_cast %220 : vector<2x8xf32> to vector<2x8x1xf32>
    %222 = vector.broadcast %221 : vector<2x8x1xf32> to vector<2x8x8xf32>
    %223 = arith.subf %219, %222 : vector<2x8x8xf32>
    %224 = math.exp %223 : vector<2x8x8xf32>
    %cst_85 = arith.constant dense<0.000000e+00> : vector<2x8xf32>
    %225 = vector.multi_reduction <add>, %224, %cst_85 [2] : vector<2x8x8xf32> to vector<2x8xf32>
    %226 = vector.shape_cast %225 : vector<2x8xf32> to vector<2x8x1xf32>
    %227 = tpu.reciprocal %226 {approx = true} : vector<2x8x1xf32> -> vector<2x8x1xf32>
    %228 = vector.broadcast %227 : vector<2x8x1xf32> to vector<2x8x8xf32>
    %229 = arith.mulf %224, %228 : vector<2x8x8xf32>
    %230 = arith.truncf %229 : vector<2x8x8xf32> to vector<2x8x8xbf16>
    "tpu.trace_start"() <{level = 10 : i32, message = "bqk,bkd->bqd"}> : () -> ()
    %cst_86 = arith.constant dense<0.000000e+00> : vector<2x8x8xf32>
    %231 = tpu.matmul %230, %215, %cst_86 {dimension_numbers = #tpu.dot_dimension_numbers<[2], [1], [1], [2], [0, 0, 0, 1, 1, 2], [0], [0]>} : vector<2x8x8xbf16>, vector<2x8x8xbf16>, vector<2x8x8xf32> -> vector<2x8x8xf32>
    "tpu.trace_stop"() : () -> ()
    %232 = vector.extract_strided_slice %193 {offsets = [0, 0, 16], sizes = [2, 8, 8], strides = [1, 1, 1]} : vector<2x8x96xbf16> to vector<2x8x8xbf16>
    %233 = vector.extract_strided_slice %193 {offsets = [0, 0, 48], sizes = [2, 8, 8], strides = [1, 1, 1]} : vector<2x8x96xbf16> to vector<2x8x8xbf16>
    %234 = vector.extract_strided_slice %193 {offsets = [0, 0, 80], sizes = [2, 8, 8], strides = [1, 1, 1]} : vector<2x8x96xbf16> to vector<2x8x8xbf16>
    "tpu.trace_start"() <{level = 10 : i32, message = "bqd,bkd->bqk"}> : () -> ()
    %cst_87 = arith.constant dense<0.000000e+00> : vector<2x8x8xf32>
    %235 = tpu.matmul %232, %233, %cst_87 {dimension_numbers = #tpu.dot_dimension_numbers<[2], [2], [1], [1], [0, 0, 0, 1, 1, 1], [0], [0]>} : vector<2x8x8xbf16>, vector<2x8x8xbf16>, vector<2x8x8xf32> -> vector<2x8x8xf32>
    "tpu.trace_stop"() : () -> ()
    %236 = vector.shape_cast %13 : vector<8x8xf32> to vector<1x8x8xf32>
    %237 = vector.broadcast %236 : vector<1x8x8xf32> to vector<2x8x8xf32>
    %238 = arith.addf %235, %237 : vector<2x8x8xf32>
    %cst_88 = arith.constant dense<0xFF800000> : vector<2x8xf32>
    %239 = vector.multi_reduction <maximumf>, %238, %cst_88 [2] : vector<2x8x8xf32> to vector<2x8xf32>
    %240 = vector.shape_cast %239 : vector<2x8xf32> to vector<2x8x1xf32>
    %241 = vector.broadcast %240 : vector<2x8x1xf32> to vector<2x8x8xf32>
    %242 = arith.subf %238, %241 : vector<2x8x8xf32>
    %243 = math.exp %242 : vector<2x8x8xf32>
    %cst_89 = arith.constant dense<0.000000e+00> : vector<2x8xf32>
    %244 = vector.multi_reduction <add>, %243, %cst_89 [2] : vector<2x8x8xf32> to vector<2x8xf32>
    %245 = vector.shape_cast %244 : vector<2x8xf32> to vector<2x8x1xf32>
    %246 = tpu.reciprocal %245 {approx = true} : vector<2x8x1xf32> -> vector<2x8x1xf32>
    %247 = vector.broadcast %246 : vector<2x8x1xf32> to vector<2x8x8xf32>
    %248 = arith.mulf %243, %247 : vector<2x8x8xf32>
    %249 = arith.truncf %248 : vector<2x8x8xf32> to vector<2x8x8xbf16>
    "tpu.trace_start"() <{level = 10 : i32, message = "bqk,bkd->bqd"}> : () -> ()
    %cst_90 = arith.constant dense<0.000000e+00> : vector<2x8x8xf32>
    %250 = tpu.matmul %249, %234, %cst_90 {dimension_numbers = #tpu.dot_dimension_numbers<[2], [1], [1], [2], [0, 0, 0, 1, 1, 2], [0], [0]>} : vector<2x8x8xbf16>, vector<2x8x8xbf16>, vector<2x8x8xf32> -> vector<2x8x8xf32>
    "tpu.trace_stop"() : () -> ()
    %251 = vector.extract_strided_slice %193 {offsets = [0, 0, 24], sizes = [2, 8, 8], strides = [1, 1, 1]} : vector<2x8x96xbf16> to vector<2x8x8xbf16>
    %252 = vector.extract_strided_slice %193 {offsets = [0, 0, 56], sizes = [2, 8, 8], strides = [1, 1, 1]} : vector<2x8x96xbf16> to vector<2x8x8xbf16>
    %253 = vector.extract_strided_slice %193 {offsets = [0, 0, 88], sizes = [2, 8, 8], strides = [1, 1, 1]} : vector<2x8x96xbf16> to vector<2x8x8xbf16>
    "tpu.trace_start"() <{level = 10 : i32, message = "bqd,bkd->bqk"}> : () -> ()
    %cst_91 = arith.constant dense<0.000000e+00> : vector<2x8x8xf32>
    %254 = tpu.matmul %251, %252, %cst_91 {dimension_numbers = #tpu.dot_dimension_numbers<[2], [2], [1], [1], [0, 0, 0, 1, 1, 1], [0], [0]>} : vector<2x8x8xbf16>, vector<2x8x8xbf16>, vector<2x8x8xf32> -> vector<2x8x8xf32>
    "tpu.trace_stop"() : () -> ()
    %255 = vector.shape_cast %13 : vector<8x8xf32> to vector<1x8x8xf32>
    %256 = vector.broadcast %255 : vector<1x8x8xf32> to vector<2x8x8xf32>
    %257 = arith.addf %254, %256 : vector<2x8x8xf32>
    %cst_92 = arith.constant dense<0xFF800000> : vector<2x8xf32>
    %258 = vector.multi_reduction <maximumf>, %257, %cst_92 [2] : vector<2x8x8xf32> to vector<2x8xf32>
    %259 = vector.shape_cast %258 : vector<2x8xf32> to vector<2x8x1xf32>
    %260 = vector.broadcast %259 : vector<2x8x1xf32> to vector<2x8x8xf32>
    %261 = arith.subf %257, %260 : vector<2x8x8xf32>
    %262 = math.exp %261 : vector<2x8x8xf32>
    %cst_93 = arith.constant dense<0.000000e+00> : vector<2x8xf32>
    %263 = vector.multi_reduction <add>, %262, %cst_93 [2] : vector<2x8x8xf32> to vector<2x8xf32>
    %264 = vector.shape_cast %263 : vector<2x8xf32> to vector<2x8x1xf32>
    %265 = tpu.reciprocal %264 {approx = true} : vector<2x8x1xf32> -> vector<2x8x1xf32>
    %266 = vector.broadcast %265 : vector<2x8x1xf32> to vector<2x8x8xf32>
    %267 = arith.mulf %262, %266 : vector<2x8x8xf32>
    %268 = arith.truncf %267 : vector<2x8x8xf32> to vector<2x8x8xbf16>
    "tpu.trace_start"() <{level = 10 : i32, message = "bqk,bkd->bqd"}> : () -> ()
    %cst_94 = arith.constant dense<0.000000e+00> : vector<2x8x8xf32>
    %269 = tpu.matmul %268, %253, %cst_94 {dimension_numbers = #tpu.dot_dimension_numbers<[2], [1], [1], [2], [0, 0, 0, 1, 1, 2], [0], [0]>} : vector<2x8x8xbf16>, vector<2x8x8xbf16>, vector<2x8x8xf32> -> vector<2x8x8xf32>
    "tpu.trace_stop"() : () -> ()
    %270 = tpu.concatenate %212, %231, %250, %269 in 2 : vector<2x8x8xf32>, vector<2x8x8xf32>, vector<2x8x8xf32>, vector<2x8x8xf32> -> vector<2x8x32xf32>
    %271 = vector.shape_cast %270 : vector<2x8x32xf32> to vector<16x32xf32>
    %272 = arith.truncf %271 : vector<16x32xf32> to vector<16x32xbf16>
    %cst_95 = arith.constant dense<0.000000e+00> : vector<16x32xf32>
    %273 = tpu.matmul %272, %183, %cst_95 {dimension_numbers = #tpu.dot_dimension_numbers<[1], [0], [0], [1], [0, 0, 1, 1], [], []>} : vector<16x32xbf16>, vector<32x32xbf16>, vector<16x32xf32> -> vector<16x32xf32>
    %c1_96 = arith.constant 1 : index
    %c0_97 = arith.constant 0 : index
    %c0_98 = arith.constant 0 : index
    %274 = vector.load %arg7[%c1_96, %c0_97, %c0_98] : memref<2x1x32xf32, #tpu.memory_space<vmem>>, vector<1x1x32xf32>
    %275 = vector.shape_cast %274 : vector<1x1x32xf32> to vector<1x32xf32>
    %276 = vector.broadcast %275 : vector<1x32xf32> to vector<16x32xf32>
    %277 = arith.addf %273, %276 : vector<16x32xf32>
    %278 = arith.addf %179, %277 : vector<16x32xf32>
    %279 = vector.extract_strided_slice %185 {offsets = [0, 0], sizes = [1, 32], strides = [1, 1]} : vector<4x32xf32> to vector<1x32xf32>
    %280 = vector.extract_strided_slice %185 {offsets = [1, 0], sizes = [1, 32], strides = [1, 1]} : vector<4x32xf32> to vector<1x32xf32>
    %cst_99 = arith.constant dense<0.000000e+00> : vector<16xf32>
    %281 = vector.multi_reduction <add>, %278, %cst_99 [1] : vector<16x32xf32> to vector<16xf32>
    %282 = vector.shape_cast %281 : vector<16xf32> to vector<16x1xf32>
    %cst_100 = arith.constant 3.200000e+01 : f32
    %283 = vector.broadcast %cst_100 : f32 to vector<16x1xf32>
    %284 = arith.divf %282, %283 : vector<16x1xf32>
    %285 = vector.broadcast %284 : vector<16x1xf32> to vector<16x32xf32>
    %286 = arith.subf %278, %285 : vector<16x32xf32>
    %287 = arith.mulf %286, %286 : vector<16x32xf32>
    %cst_101 = arith.constant dense<0.000000e+00> : vector<16xf32>
    %288 = vector.multi_reduction <add>, %287, %cst_101 [1] : vector<16x32xf32> to vector<16xf32>
    %289 = vector.shape_cast %288 : vector<16xf32> to vector<16x1xf32>
    %cst_102 = arith.constant 3.200000e+01 : f32
    %290 = vector.broadcast %cst_102 : f32 to vector<16x1xf32>
    %291 = arith.divf %289, %290 : vector<16x1xf32>
    %292 = vector.broadcast %284 : vector<16x1xf32> to vector<16x32xf32>
    %293 = arith.subf %278, %292 : vector<16x32xf32>
    %cst_103 = arith.constant 9.99999974E-6 : f32
    %294 = vector.broadcast %cst_103 : f32 to vector<16x1xf32>
    %295 = arith.addf %291, %294 : vector<16x1xf32>
    %296 = math.rsqrt %295 : vector<16x1xf32>
    %297 = vector.broadcast %296 : vector<16x1xf32> to vector<16x32xf32>
    %298 = arith.mulf %293, %297 : vector<16x32xf32>
    %299 = vector.broadcast %279 : vector<1x32xf32> to vector<16x32xf32>
    %300 = arith.mulf %298, %299 : vector<16x32xf32>
    %301 = vector.broadcast %280 : vector<1x32xf32> to vector<16x32xf32>
    %302 = arith.addf %300, %301 : vector<16x32xf32>
    %303 = arith.truncf %302 : vector<16x32xf32> to vector<16x32xbf16>
    %c1_104 = arith.constant 1 : index
    %c0_105 = arith.constant 0 : index
    %c0_106 = arith.constant 0 : index
    %304 = vector.load %arg9[%c1_104, %c0_105, %c0_106] : memref<2x32x64xbf16, #tpu.memory_space<vmem>>, vector<1x32x64xbf16>
    %305 = vector.shape_cast %304 : vector<1x32x64xbf16> to vector<32x64xbf16>
    %cst_107 = arith.constant dense<0.000000e+00> : vector<16x64xf32>
    %306 = tpu.matmul %303, %305, %cst_107 {dimension_numbers = #tpu.dot_dimension_numbers<[1], [0], [0], [1], [0, 0, 1, 1], [], []>} : vector<16x32xbf16>, vector<32x64xbf16>, vector<16x64xf32> -> vector<16x64xf32>
    %c1_108 = arith.constant 1 : index
    %c0_109 = arith.constant 0 : index
    %c0_110 = arith.constant 0 : index
    %307 = vector.load %arg10[%c1_108, %c0_109, %c0_110] : memref<2x1x64xf32, #tpu.memory_space<vmem>>, vector<1x1x64xf32>
    %308 = vector.shape_cast %307 : vector<1x1x64xf32> to vector<1x64xf32>
    %309 = vector.broadcast %308 : vector<1x64xf32> to vector<16x64xf32>
    %310 = arith.addf %306, %309 : vector<16x64xf32>
    %cst_111 = arith.constant 0.000000e+00 : f32
    %311 = vector.broadcast %cst_111 : f32 to vector<16x64xf32>
    %312 = arith.maximumf %310, %311 : vector<16x64xf32>
    %313 = arith.truncf %312 : vector<16x64xf32> to vector<16x64xbf16>
    %c1_112 = arith.constant 1 : index
    %c0_113 = arith.constant 0 : index
    %c0_114 = arith.constant 0 : index
    %314 = vector.load %arg11[%c1_112, %c0_113, %c0_114] : memref<2x64x32xbf16, #tpu.memory_space<vmem>>, vector<1x64x32xbf16>
    %315 = vector.shape_cast %314 : vector<1x64x32xbf16> to vector<64x32xbf16>
    %cst_115 = arith.constant dense<0.000000e+00> : vector<16x32xf32>
    %316 = tpu.matmul %313, %315, %cst_115 {dimension_numbers = #tpu.dot_dimension_numbers<[1], [0], [0], [1], [0, 0, 1, 1], [], []>} : vector<16x64xbf16>, vector<64x32xbf16>, vector<16x32xf32> -> vector<16x32xf32>
    %c1_116 = arith.constant 1 : index
    %c0_117 = arith.constant 0 : index
    %c0_118 = arith.constant 0 : index
    %317 = vector.load %arg12[%c1_116, %c0_117, %c0_118] : memref<2x1x32xf32, #tpu.memory_space<vmem>>, vector<1x1x32xf32>
    %318 = vector.shape_cast %317 : vector<1x1x32xf32> to vector<1x32xf32>
    %319 = vector.broadcast %318 : vector<1x32xf32> to vector<16x32xf32>
    %320 = arith.addf %316, %319 : vector<16x32xf32>
    %321 = arith.addf %302, %320 : vector<16x32xf32>
    %322 = vector.extract_strided_slice %185 {offsets = [2, 0], sizes = [1, 32], strides = [1, 1]} : vector<4x32xf32> to vector<1x32xf32>
    %323 = vector.extract_strided_slice %185 {offsets = [3, 0], sizes = [1, 32], strides = [1, 1]} : vector<4x32xf32> to vector<1x32xf32>
    %cst_119 = arith.constant dense<0.000000e+00> : vector<16xf32>
    %324 = vector.multi_reduction <add>, %321, %cst_119 [1] : vector<16x32xf32> to vector<16xf32>
    %325 = vector.shape_cast %324 : vector<16xf32> to vector<16x1xf32>
    %cst_120 = arith.constant 3.200000e+01 : f32
    %326 = vector.broadcast %cst_120 : f32 to vector<16x1xf32>
    %327 = arith.divf %325, %326 : vector<16x1xf32>
    %328 = vector.broadcast %327 : vector<16x1xf32> to vector<16x32xf32>
    %329 = arith.subf %321, %328 : vector<16x32xf32>
    %330 = arith.mulf %329, %329 : vector<16x32xf32>
    %cst_121 = arith.constant dense<0.000000e+00> : vector<16xf32>
    %331 = vector.multi_reduction <add>, %330, %cst_121 [1] : vector<16x32xf32> to vector<16xf32>
    %332 = vector.shape_cast %331 : vector<16xf32> to vector<16x1xf32>
    %cst_122 = arith.constant 3.200000e+01 : f32
    %333 = vector.broadcast %cst_122 : f32 to vector<16x1xf32>
    %334 = arith.divf %332, %333 : vector<16x1xf32>
    %335 = vector.broadcast %327 : vector<16x1xf32> to vector<16x32xf32>
    %336 = arith.subf %321, %335 : vector<16x32xf32>
    %cst_123 = arith.constant 9.99999974E-6 : f32
    %337 = vector.broadcast %cst_123 : f32 to vector<16x1xf32>
    %338 = arith.addf %334, %337 : vector<16x1xf32>
    %339 = math.rsqrt %338 : vector<16x1xf32>
    %340 = vector.broadcast %339 : vector<16x1xf32> to vector<16x32xf32>
    %341 = arith.mulf %336, %340 : vector<16x32xf32>
    %342 = vector.broadcast %322 : vector<1x32xf32> to vector<16x32xf32>
    %343 = arith.mulf %341, %342 : vector<16x32xf32>
    %344 = vector.broadcast %323 : vector<1x32xf32> to vector<16x32xf32>
    %345 = arith.addf %343, %344 : vector<16x32xf32>
    %346 = vector.shape_cast %345 : vector<16x32xf32> to vector<2x8x32xf32>
    %cst_124 = arith.constant dense<0.000000e+00> : vector<2x32xf32>
    %347 = vector.multi_reduction <add>, %346, %cst_124 [1] : vector<2x8x32xf32> to vector<2x32xf32>
    %cst_125 = arith.constant 8.000000e+00 : f32
    %348 = vector.broadcast %cst_125 : f32 to vector<2x32xf32>
    %349 = arith.divf %347, %348 : vector<2x32xf32>
    %350 = arith.truncf %349 : vector<2x32xf32> to vector<2x32xbf16>
    %c0_126 = arith.constant 0 : index
    %c0_127 = arith.constant 0 : index
    %351 = vector.load %arg13[%c0_126, %c0_127] : memref<32x128xbf16, #tpu.memory_space<vmem>>, vector<32x128xbf16>
    %cst_128 = arith.constant dense<0.000000e+00> : vector<2x128xf32>
    %352 = tpu.matmul %350, %351, %cst_128 {dimension_numbers = #tpu.dot_dimension_numbers<[1], [0], [0], [1], [0, 0, 1, 1], [], []>} : vector<2x32xbf16>, vector<32x128xbf16>, vector<2x128xf32> -> vector<2x128xf32>
    %c0_129 = arith.constant 0 : index
    %c0_130 = arith.constant 0 : index
    %353 = vector.load %arg14[%c0_129, %c0_130] : memref<1x128xf32, #tpu.memory_space<vmem>>, vector<1x128xf32>
    %354 = vector.broadcast %353 : vector<1x128xf32> to vector<2x128xf32>
    %355 = arith.addf %352, %354 : vector<2x128xf32>
    %cst_131 = arith.constant 0.000000e+00 : f32
    %356 = vector.broadcast %cst_131 : f32 to vector<2x128xf32>
    %357 = arith.maximumf %355, %356 : vector<2x128xf32>
    %358 = arith.truncf %357 : vector<2x128xf32> to vector<2x128xbf16>
    %c0_132 = arith.constant 0 : index
    %c0_133 = arith.constant 0 : index
    %359 = vector.load %arg15[%c0_132, %c0_133] : memref<128x64xbf16, #tpu.memory_space<vmem>>, vector<128x64xbf16>
    %cst_134 = arith.constant dense<0.000000e+00> : vector<2x64xf32>
    %360 = tpu.matmul %358, %359, %cst_134 {dimension_numbers = #tpu.dot_dimension_numbers<[1], [0], [0], [1], [0, 0, 1, 1], [], []>} : vector<2x128xbf16>, vector<128x64xbf16>, vector<2x64xf32> -> vector<2x64xf32>
    %c0_135 = arith.constant 0 : index
    %c0_136 = arith.constant 0 : index
    %361 = vector.load %arg16[%c0_135, %c0_136] : memref<1x64xf32, #tpu.memory_space<vmem>>, vector<1x64xf32>
    %362 = vector.broadcast %361 : vector<1x64xf32> to vector<2x64xf32>
    %363 = arith.addf %360, %362 : vector<2x64xf32>
    %cst_137 = arith.constant 0.000000e+00 : f32
    %364 = vector.broadcast %cst_137 : f32 to vector<2x64xf32>
    %365 = arith.maximumf %363, %364 : vector<2x64xf32>
    %c0_138 = arith.constant 0 : index
    %c0_139 = arith.constant 0 : index
    %366 = vector.load %arg17[%c0_138, %c0_139] : memref<1x64xf32, #tpu.memory_space<vmem>>, vector<1x64xf32>
    %367 = vector.broadcast %366 : vector<1x64xf32> to vector<2x64xf32>
    %368 = arith.mulf %365, %367 : vector<2x64xf32>
    %cst_140 = arith.constant dense<0.000000e+00> : vector<2xf32>
    %369 = vector.multi_reduction <add>, %368, %cst_140 [1] : vector<2x64xf32> to vector<2xf32>
    %370 = vector.shape_cast %369 : vector<2xf32> to vector<2x1xf32>
    %c0_141 = arith.constant 0 : index
    %c0_142 = arith.constant 0 : index
    %371 = vector.load %arg18[%c0_141, %c0_142] : memref<1x1xf32, #tpu.memory_space<vmem>>, vector<1x1xf32>
    %372 = vector.broadcast %371 : vector<1x1xf32> to vector<2x1xf32>
    %373 = arith.addf %370, %372 : vector<2x1xf32>
    %cst_143 = arith.constant 0.000000e+00 : f32
    %374 = vector.broadcast %cst_143 : f32 to vector<2x1xf32>
    %375 = arith.subf %374, %373 : vector<2x1xf32>
    %376 = math.exp %375 : vector<2x1xf32>
    %cst_144 = arith.constant 1.000000e+00 : f32
    %377 = vector.broadcast %cst_144 : f32 to vector<2x1xf32>
    %378 = arith.addf %377, %376 : vector<2x1xf32>
    %cst_145 = arith.constant 1.000000e+00 : f32
    %379 = vector.broadcast %cst_145 : f32 to vector<2x1xf32>
    %380 = arith.divf %379, %378 : vector<2x1xf32>
    %381 = vector.shape_cast %380 : vector<2x1xf32> to vector<2x1xf32>
    %382 = vector.broadcast %381 : vector<2x1xf32> to vector<2x128xf32>
    %c0_146 = arith.constant 0 : index
    %c0_147 = arith.constant 0 : index
    %383 = vector.load %arg19[%c0_146, %c0_147] : memref<2x128xf32, #tpu.memory_space<vmem>>, vector<2x128xf32>
    tpu.vector_store %arg19[%c0_146, %c0_147], %382 {strides = array<i32>} : memref<2x128xf32, #tpu.memory_space<vmem>>, vector<2x128xf32>,
    return
  }
}

</mosaic_0001>

<bundles_post_ra>
// kernel: tpu_custom_call.1
= control target key start
LH: loop header
LB: loop body
LE: loop exit
PB: predicated region body
PF: predicated region fallthrough
CT: control target
= control target key end

     0   :  { %s4446_s0 = inlined_call_operand.vmem [shape: bf16[16,16], index: 0, kind: input, shape index: {}]   ;;  %s4447_s1 = inlined_call_operand.vmem [shape: bf16[16,32], index: 1, kind: input, shape index: {}]   ;;  %s4448_s2 = inlined_call_operand.vmem [shape: f32[1,32], index: 2, kind: input, shape index: {}]   ;;  %s4449_s3 = inlined_call_operand.vmem [shape: f32[16,32], index: 3, kind: input, shape index: {}]   ;;  %s4450_s4 = inlined_call_operand.vmem [shape: bf16[2,32,96], index: 4, kind: input, shape index: {}]   ;;  %s4451_s5 = inlined_call_operand.vmem [shape: f32[2,1,96], index: 5, kind: input, shape index: {}]   ;;  %s4452_s6 = inlined_call_operand.vmem [shape: bf16[2,32,32], index: 6, kind: input, shape index: {}]   ;;  %s4453_s7 = inlined_call_operand.vmem [shape: f32[2,1,32], index: 7, kind: input, shape index: {}]   ;;  %s4454_s8 = inlined_call_operand.vmem [shape: f32[2,4,32], index: 8, kind: input, shape index: {}]   ;;  %s4455_s9 = inlined_call_operand.vmem [shape: bf16[2,32,64], index: 9, kind: input, shape index: {}]   ;;  %s4456_s10 = inlined_call_operand.vmem [shape: f32[2,1,64], index: 10, kind: input, shape index: {}]   ;;  %s4457_s11 = inlined_call_operand.vmem [shape: bf16[2,64,32], index: 11, kind: input, shape index: {}]   ;;  %s4458_s12 = inlined_call_operand.vmem [shape: f32[2,1,32], index: 12, kind: input, shape index: {}]   ;;  %s4459_s13 = inlined_call_operand.vmem [shape: bf16[32,128], index: 13, kind: input, shape index: {}]   ;;  %s4460_s14 = inlined_call_operand.vmem [shape: f32[1,128], index: 14, kind: input, shape index: {}]   ;;  %s4461_s15 = inlined_call_operand.vmem [shape: bf16[128,64], index: 15, kind: input, shape index: {}]   ;;  %s4462_s16 = inlined_call_operand.vmem [shape: f32[1,64], index: 16, kind: input, shape index: {}]   ;;  %s4463_s17 = inlined_call_operand.vmem [shape: f32[1,64], index: 17, kind: input, shape index: {}]   ;;  %s4464_s18 = inlined_call_operand.<no memory space> [shape: f32[1,1], index: 18, kind: input, shape index: {}]   ;;  %s4465_s19 = inlined_call_operand.hbm [shape: f32[2,128], index: 19, kind: output, shape index: {}]  }
   0x1   :  { %4472 = sst [smem:[#allocation6_spill]] %s4446_s0  ;;  %v24_v0 = vstv %s4464_s18 }
   0x2   :  { %4473 = sst [smem:[#allocation7_spill]] %s4447_s1  ;;  %25 = vst [vmem:[#allocation2] sm:$0x1] %v24_v0 }
   0x3   :  { %4474 = sst [smem:[#allocation8_spill]] %s4448_s2 }
   0x4   :  { %4475 = sst [smem:[#allocation9_spill]] %s4449_s3 }
   0x5   :  { %s4476_s1 = sld [smem:[#allocation7_spill]]  ;;  %v3678_v2 = vmov 0.0   ;;  %s4477_s23 = sld [smem:[#allocation6_spill]]  ;;  %vm3679_vm0 = vmmov 0   ;;  %vm88_vm1 = vcmask 130048  }
   0x6   :  { %3190 = vmatprep.subr.bf16.mxu0 %v3678_v2  ;;  %3196 = vmatprep.subr.bf16.mxu1 %v3678_v2 }
   0x7   :  { %3192 = vmatprep.mubr.msk.bf16.mxu0 %vm3679_vm0, %v3678_v2  ;;  %3200 = vmatprep.mubr.msk.bf16.mxu1 %vm3679_vm0, %v3678_v2 }
   0xb   :  { %v3538_v1 = vld [vmem:[%s4476_s1] sm:$0xff]  }
   0xc   :  { %v3539_v3 = vld [vmem:[%s4477_s23] sm:$0xff]   ;;  %3191 = vmatpush3.bf16.msra.mxu0 %v3538_v1 }
   0xd   :  { %3204 = vmatprep.subr.bf16.mxu0 %v3678_v2 }
   0xf   :  { %3193 = vmatmul.mubr.msk.bf16.vlgmr.msra.gmra.mrb[0].mxu0 %vm88_vm1, %v3539_v3 }
  0x10   :  { %3206 = vmatprep.mubr.msk.bf16.mxu0 %vm3679_vm0, %v3678_v2 }
  0x11   :  { %26 = vsyncpa [#allocation4], 0  ;;  %v3540_v4 = vld [vmem:[%s4450_s4] sm:$0xff]   ;;  %v3541_v5 = vld [vmem:[%s4450_s4 + $0x8] sm:$0xff]   ;;  %s4478_s28 = sld [smem:[#allocation8_spill]]  ;;  %s4479_s30 = sld [smem:[#allocation9_spill]]  ;;  %v137_v31 = vlaneseq }
  0x12   :  { %3197 = vmatpush3.bf16.msra.mxu1 %v3540_v4  ;;  %vm172_vm2 = vcmask 261120   ;;  %v2976_v18 = vld [vmem:[%s4451_s5] ss:$0 sm:$0xff]  ;;  %s3680_s2 = smov 96   ;;  %vm222_vm3 = vcmask 64512   ;;  %s3682_s23 = smov 64  }
  0x13   :  { %3198 = vmatprep.subr.bf16.mxu1 %v3678_v2  ;;  %v3865_v32 = vshrl.u32 %v137_v31, 7  ;;  %v140_v33 = vand.u32 127, %v137_v31  ;;  %v3681_v34 = vmov -1e+30   ;;  %s3683_s18 = smov 88   ;;  %vm347_vm5 = vcmask 1043456  }
  0x14   :  { %s3684_s24 = smov 120   ;;  %s3685_s25 = smov 56   ;;  %vm1127_vm6 = vcmask 195584   ;;  %vm1345_vm7 = vcmask 523264   ;;  %vm2754_vm8 = vcmask 1041409   ;;  %vm2934_vm9 = vcmask 517120  }
  0x15   :  { %vm141_vm4 = vcmp.le.s32.totalorder %v140_v33, %v3865_v32  ;;  %s3686_s3 = smov 80   ;;  %s3687_s26 = smov 112  }
  0x16   :  { %3199 = vmatpush3.bf16.msra.mxu1 %v3541_v5  ;;  %v3868_v35 = vsel %vm141_vm4, 0.0, %v3681_v34  ;;  %s3688_s27 = smov 48   ;;  %s3690_s29 = smov 104  }
  0x17   :  { %3210 = vmatprep.subr.bf16.mxu1 %v3678_v2  ;;  %v2972_v6 = vld [vmem:[%s4478_s28] ss:$0 sm:$0xff]  ;;  %v134_v12 = vld [vmem:[%s4479_s30 + $0x8] sm:$0xff]  ;;  %s3689_s28 = smov 72   ;;  %s4470_s0 = smov 40  }
  0x18   :  { %v133_v10 = vld [vmem:[%s4479_s30] sm:$0xff]  ;;  %s4469_s30 = smov 8   ;;  %s4467_s20 = smov 16  }
  0x19   :  { %s4468_s21 = smov 24  }
  0xe2   :  { %v126_v7 = vpop.f32.mrb[0].mxu0 }
  0xe3   :  { %v127_v8 = vadd.f32 %v2972_v6, %v126_v7  ;;  %v3194_v9 = vpop.f32.mrb[1].mxu0 }
  0xe4   :  { %v129_v11 = vpop.f32.mrb[2].mxu0 }
  0xe5   :  { %v130_v13 = vadd.f32 %v2972_v6, %v129_v11  ;;  %v3195_v14 = vpop.f32.mrb[3].mxu0  ;;  %v3833_v15 = vadd.f32 %v133_v10, %v127_v8 }
  0xe7   :  { %v3835_v16 = vadd.f32 %v134_v12, %v130_v13 }
  0xe9   :  { %v152_v17 = vpack.c.bf16 %v3835_v16, %v3833_v15 }
  0xeb   :  { %3201 = vmatmul.mubr.msk.bf16.vlgmr.msra.gmra.mrb[0].mxu1 %vm172_vm2, %v152_v17 }
  0xec   :  { %3212 = vmatprep.mubr.msk.bf16.mxu1 %vm3679_vm0, %v3678_v2 }
 0x1be   :  { %v210_v19 = vpop.f32.mrb[0].mxu1 }
 0x1bf   :  { %v211_v20 = vadd.f32 %v2976_v18, %v210_v19  ;;  %v3202_v21 = vpop.f32.mrb[1].mxu1 }
 0x1c0   :  { %v213_v22 = vpop.f32.mrb[2].mxu1 }
 0x1c1   :  { %v3845_v23 = vpack.c.bf16 %v211_v20, %v211_v20  ;;  %v214_v24 = vadd.f32 %v2976_v18, %v213_v22  ;;  %v3203_v25 = vpop.f32.mrb[3].mxu1 }
 0x1c3   :  { %220 = vrot.lane.b32.xlu0 %v3845_v23, %s3680_s2  ;;  %v3849_v26 = vpack.c.bf16 %v214_v24, %v214_v24 }
 0x1c7   :  { %270 = vrot.lane.b32.xlu0 %v3849_v26, %s3680_s2 }
 0x235   :  { %v221_v27 = vpop.permute.xlu0 %220 }
 0x236   :  { %v227_v28 = vsel %vm222_vm3, %v221_v27, 0 }
 0x237   :  { %3205 = vmatpush3.bf16.xpose.msra.mxu0 %v227_v28 }
 0x238   :  { %3216 = vmatprep.subr.bf16.mxu0 %v3678_v2 }
 0x239   :  { %v271_v29 = vpop.permute.xlu0 %270 }
 0x23a   :  { %v276_v30 = vsel %vm222_vm3, %v271_v29, 0 }
 0x23b   :  { %3211 = vmatpush3.bf16.xpose.msra.mxu1 %v276_v30 }
 0x23c   :  { %3222 = vmatprep.subr.bf16.mxu1 %v3678_v2 }
 0x23e   :  { %3207 = vmatmul.mubr.msk.bf16.vlgmr.msra.gmra.mrb[4].mxu0 %vm222_vm3, %v3845_v23 }
 0x23f   :  { %3218 = vmatprep.mubr.msk.bf16.mxu0 %vm3679_vm0, %v3678_v2 }
 0x242   :  { %3213 = vmatmul.mubr.msk.bf16.vlgmr.msra.gmra.mrb[4].mxu1 %vm222_vm3, %v3849_v26 }
 0x243   :  { %3224 = vmatprep.mubr.msk.bf16.mxu1 %vm3679_vm0, %v3678_v2 }
 0x311   :  { %v263_v36 = vpop.f32.mrb[4].mxu0 }
 0x312   :  { %v264_v37 = vadd.f32 %v263_v36, %v3868_v35  ;;  %v3208_v38 = vpop.f32.mrb[5].mxu0 }
 0x313   :  { %v266_v39 = vpop.f32.mrb[6].mxu0 }
 0x314   :  { %v3209_v40 = vpop.f32.mrb[7].mxu0  ;;  %v318_v41 = vsel %vm222_vm3, %v264_v37, -inf }
 0x315   :  { %v312_v42 = vpop.f32.mrb[4].mxu1  ;;  %319 = vmax.xlane.f32.xlu1 %v318_v41 }
 0x316   :  { %v313_v43 = vadd.f32 %v312_v42, %v3868_v35  ;;  %v3214_v44 = vpop.f32.mrb[5].mxu1 }
 0x317   :  { %v315_v45 = vpop.f32.mrb[6].mxu1 }
 0x318   :  { %v3215_v46 = vpop.f32.mrb[7].mxu1  ;;  %v321_v47 = vsel %vm222_vm3, %v313_v43, -inf }
 0x319   :  { %322 = vmax.xlane.f32.xlu1 %v321_v47 }
 0x32a   :  { %342 = vrot.lane.b32.xlu1 %v3845_v23, %s3682_s23 }
 0x32e   :  { %391 = vrot.lane.b32.xlu1 %v3849_v26, %s3682_s23 }
 0x332   :  { %441 = vrot.lane.b32.xlu1 %v3845_v23, %s3683_s18 }
 0x3a2   :  { %v320_v48 = vpop.xlane.xlu1 %319 }
 0x3a3   :  { %v324_v49 = vsub.f32 %v264_v37, %v320_v48 }
 0x3a5   :  { %v326_v50 = vmul.f32 1.442695, %v324_v49 }
 0x3a6   :  { %v323_v51 = vpop.xlane.xlu1 %322 }
 0x3a7   :  { %3570 = vpow2.f32 %v326_v50  ;;  %v325_v52 = vsub.f32 %v313_v43, %v323_v51 }
 0x3a9   :  { %v328_v53 = vmul.f32 1.442695, %v325_v52 }
 0x3aa   :  { %v343_v54 = vpop.permute.xlu1 %342 }
 0x3ab   :  { %3572 = vpow2.f32 %v328_v53  ;;  %v349_v55 = vsel %vm347_vm5, %v343_v54, 0 }
 0x3ac   :  { %3217 = vmatpush3.bf16.msra.mxu0 %v349_v55 }
 0x3ad   :  { %3228 = vmatprep.subr.bf16.mxu0 %v3678_v2 }
 0x3ae   :  { %v392_v56 = vpop.permute.xlu1 %391 }
 0x3af   :  { %v397_v57 = vsel %vm347_vm5, %v392_v56, 0 }
 0x3b0   :  { %3223 = vmatpush3.bf16.msra.mxu1 %v397_v57 }
 0x3b1   :  { %v3571_v58 = vpop.eup %3570  ;;  %3234 = vmatprep.subr.bf16.mxu1 %v3678_v2 }
 0x3b2   :  { %v330_v59 = vsel %vm222_vm3, %v3571_v58, 0.0  ;;  %v442_v62 = vpop.permute.xlu1 %441 }
 0x3b3   :  { %331 = vadd.xlane.f32.xlu0 %v330_v59  ;;  %v447_v6 = vsel %vm222_vm3, %v442_v62, 0 }
 0x3b5   :  { %v3573_v60 = vpop.eup %3572 }
 0x3b6   :  { %v333_v61 = vsel %vm222_vm3, %v3573_v60, 0.0 }
 0x3b7   :  { %334 = vadd.xlane.f32.xlu1 %v333_v61 }
 0x3c8   :  { %491 = vrot.lane.b32.xlu1 %v3849_v26, %s3683_s18 }
 0x3c9   :  { %439 = vrot.lane.b32.xlu0 %v3845_v23, %s3684_s24 }
 0x3cc   :  { %489 = vrot.lane.b32.xlu1 %v3849_v26, %s3684_s24 }
 0x440   :  { %v332_v63 = vpop.xlane.xlu0 %331 }
 0x441   :  { %3574 = vrcp.f32 %v332_v63 }
 0x444   :  { %v335_v0 = vpop.xlane.xlu1 %334  ;;  %v440_v11 = vpop.permute.xlu0 %439 }
 0x445   :  { %3576 = vrcp.f32 %v335_v0 }
 0x448   :  { %v492_v8 = vpop.permute.xlu1 %491 }
 0x449   :  { %v497_v10 = vsel %vm222_vm3, %v492_v8, 0 }
 0x44b   :  { %v3575_v1 = vpop.eup %3574 }
 0x44c   :  { %v338_v3 = vmul.f32 %v3575_v1, %v3571_v58  ;;  %v490_v12 = vpop.permute.xlu1 %489 }
 0x44e   :  { %v340_v4 = vpack.c.bf16 %v338_v3, %v338_v3 }
 0x44f   :  { %v3577_v5 = vpop.eup %3576 }
 0x450   :  { %v339_v7 = vmul.f32 %v3577_v5, %v3573_v60  ;;  %3219 = vmatmul.mubr.msk.bf16.vlgmr.msra.gmra.mrb[8].mxu0 %vm222_vm3, %v340_v4 }
 0x451   :  { %3229 = vmatpush3.bf16.xpose.msra.mxu0 %v447_v6  ;;  %3230 = vmatprep.mubr.msk.bf16.mxu0 %vm3679_vm0, %v3678_v2 }
 0x452   :  { %v341_v9 = vpack.c.bf16 %v339_v7, %v339_v7  ;;  %3240 = vmatprep.subr.bf16.mxu0 %v3678_v2 }
 0x454   :  { %3225 = vmatmul.mubr.msk.bf16.vlgmr.msra.gmra.mrb[8].mxu1 %vm222_vm3, %v341_v9 }
 0x455   :  { %3235 = vmatpush3.bf16.xpose.msra.mxu1 %v497_v10  ;;  %3236 = vmatprep.mubr.msk.bf16.mxu1 %vm3679_vm0, %v3678_v2 }
 0x456   :  { %3246 = vmatprep.subr.bf16.mxu1 %v3678_v2 }
 0x458   :  { %3231 = vmatmul.mubr.msk.bf16.vlgmr.msra.gmra.mrb[12].mxu0 %vm222_vm3, %v440_v11 }
 0x459   :  { %3242 = vmatprep.mubr.msk.bf16.mxu0 %vm3679_vm0, %v3678_v2 }
 0x45c   :  { %3237 = vmatmul.mubr.msk.bf16.vlgmr.msra.gmra.mrb[12].mxu1 %vm222_vm3, %v490_v12 }
 0x45d   :  { %3248 = vmatprep.mubr.msk.bf16.mxu1 %vm3679_vm0, %v3678_v2 }
 0x523   :  { %v3908_v13 = vpop.f32.mrb[8].mxu0 }
 0x524   :  { %v3220_v14 = vpop.f32.mrb[9].mxu0 }
 0x525   :  { %v388_v17 = vpop.f32.mrb[10].mxu0 }
 0x526   :  { %v3221_v18 = vpop.f32.mrb[11].mxu0 }
 0x527   :  { %v3910_v19 = vpop.f32.mrb[8].mxu1 }
 0x528   :  { %v3226_v20 = vpop.f32.mrb[9].mxu1 }
 0x529   :  { %v436_v21 = vpop.f32.mrb[10].mxu1 }
 0x52a   :  { %v3227_v22 = vpop.f32.mrb[11].mxu1 }
 0x52b   :  { %v483_v24 = vpop.f32.mrb[12].mxu0 }
 0x52c   :  { %v484_v25 = vadd.f32 %v483_v24, %v3868_v35  ;;  %v3232_v27 = vpop.f32.mrb[13].mxu0 }
 0x52d   :  { %v486_v28 = vpop.f32.mrb[14].mxu0 }
 0x52e   :  { %v3233_v29 = vpop.f32.mrb[15].mxu0  ;;  %v539_v30 = vsel %vm222_vm3, %v484_v25, -inf }
 0x52f   :  { %v533_v31 = vpop.f32.mrb[12].mxu1  ;;  %540 = vmax.xlane.f32.xlu1 %v539_v30 }
 0x530   :  { %v534_v33 = vadd.f32 %v533_v31, %v3868_v35  ;;  %v3238_v34 = vpop.f32.mrb[13].mxu1 }
 0x531   :  { %v536_v36 = vpop.f32.mrb[14].mxu1 }
 0x532   :  { %v3239_v37 = vpop.f32.mrb[15].mxu1  ;;  %v542_v38 = vsel %vm222_vm3, %v534_v33, -inf }
 0x533   :  { %543 = vmax.xlane.f32.xlu0 %v542_v38 }
 0x540   :  { %563 = vrot.lane.b32.xlu1 %v3845_v23, %s3685_s25 }
 0x544   :  { %661 = vrot.lane.b32.xlu1 %v3845_v23, %s3686_s3 }
 0x549   :  { %611 = vrot.lane.b32.xlu0 %v3849_v26, %s3685_s25 }
 0x54d   :  { %659 = vrot.lane.b32.xlu0 %v3845_v23, %s3687_s26 }
 0x5bc   :  { %v541_v39 = vpop.xlane.xlu1 %540 }
 0x5bd   :  { %v545_v40 = vsub.f32 %v484_v25, %v541_v39 }
 0x5bf   :  { %v547_v41 = vmul.f32 1.442695, %v545_v40 }
 0x5c0   :  { %v544_v42 = vpop.xlane.xlu0 %543  ;;  %v564_v43 = vpop.permute.xlu1 %563 }
 0x5c1   :  { %3578 = vpow2.f32 %v547_v41  ;;  %v546_v44 = vsub.f32 %v534_v33, %v544_v42  ;;  %v569_v45 = vsel %vm347_vm5, %v564_v43, 0 }
 0x5c2   :  { %3241 = vmatpush3.bf16.msra.mxu0 %v569_v45 }
 0x5c3   :  { %v549_v46 = vmul.f32 1.442695, %v546_v44  ;;  %3252 = vmatprep.subr.bf16.mxu0 %v3678_v2 }
 0x5c4   :  { %v612_v47 = vpop.permute.xlu0 %611  ;;  %v662_v53 = vpop.permute.xlu1 %661 }
 0x5c5   :  { %3580 = vpow2.f32 %v549_v46  ;;  %v617_v48 = vsel %vm347_vm5, %v612_v47, 0  ;;  %v667_v60 = vsel %vm222_vm3, %v662_v53, 0 }
 0x5c6   :  { %3247 = vmatpush3.bf16.msra.mxu1 %v617_v48 }
 0x5c7   :  { %3258 = vmatprep.subr.bf16.mxu1 %v3678_v2 }
 0x5c8   :  { %v660_v1 = vpop.permute.xlu0 %659 }
 0x5cb   :  { %v3579_v49 = vpop.eup %3578 }
 0x5cc   :  { %v551_v50 = vsel %vm222_vm3, %v3579_v49, 0.0 }
 0x5cd   :  { %552 = vadd.xlane.f32.xlu1 %v551_v50 }
 0x5cf   :  { %v3581_v51 = vpop.eup %3580 }
 0x5d0   :  { %v554_v52 = vsel %vm222_vm3, %v3581_v51, 0.0 }
 0x5d1   :  { %555 = vadd.xlane.f32.xlu1 %v554_v52 }
 0x5e2   :  { %711 = vrot.lane.b32.xlu1 %v3849_v26, %s3686_s3 }
 0x5e6   :  { %709 = vrot.lane.b32.xlu1 %v3849_v26, %s3687_s26 }
 0x65a   :  { %v553_v54 = vpop.xlane.xlu1 %552 }
 0x65b   :  { %3582 = vrcp.f32 %v553_v54 }
 0x65e   :  { %v556_v55 = vpop.xlane.xlu1 %555 }
 0x65f   :  { %3584 = vrcp.f32 %v556_v55 }
 0x662   :  { %v712_v62 = vpop.permute.xlu1 %711 }
 0x663   :  { %v717_v0 = vsel %vm222_vm3, %v712_v62, 0 }
 0x665   :  { %v3583_v56 = vpop.eup %3582 }
 0x666   :  { %v559_v57 = vmul.f32 %v3583_v56, %v3579_v49  ;;  %v710_v3 = vpop.permute.xlu1 %709 }
 0x668   :  { %v561_v58 = vpack.c.bf16 %v559_v57, %v559_v57 }
 0x669   :  { %v3585_v59 = vpop.eup %3584 }
 0x66a   :  { %v560_v61 = vmul.f32 %v3585_v59, %v3581_v51  ;;  %3243 = vmatmul.mubr.msk.bf16.vlgmr.msra.gmra.mrb[16].mxu0 %vm222_vm3, %v561_v58 }
 0x66b   :  { %3253 = vmatpush3.bf16.xpose.msra.mxu0 %v667_v60  ;;  %3254 = vmatprep.mubr.msk.bf16.mxu0 %vm3679_vm0, %v3678_v2 }
 0x66c   :  { %v562_v63 = vpack.c.bf16 %v560_v61, %v560_v61  ;;  %3264 = vmatprep.subr.bf16.mxu0 %v3678_v2 }
 0x66e   :  { %3249 = vmatmul.mubr.msk.bf16.vlgmr.msra.gmra.mrb[16].mxu1 %vm222_vm3, %v562_v63 }
 0x66f   :  { %3259 = vmatpush3.bf16.xpose.msra.mxu1 %v717_v0  ;;  %3260 = vmatprep.mubr.msk.bf16.mxu1 %vm3679_vm0, %v3678_v2 }
 0x670   :  { %3270 = vmatprep.subr.bf16.mxu1 %v3678_v2 }
 0x672   :  { %3255 = vmatmul.mubr.msk.bf16.vlgmr.msra.gmra.mrb[20].mxu0 %vm222_vm3, %v660_v1 }
 0x673   :  { %3266 = vmatprep.mubr.msk.bf16.mxu0 %vm3679_vm0, %v3678_v2 }
 0x676   :  { %3261 = vmatmul.mubr.msk.bf16.vlgmr.msra.gmra.mrb[20].mxu1 %vm222_vm3, %v710_v3 }
 0x677   :  { %3272 = vmatprep.mubr.msk.bf16.mxu1 %vm3679_vm0, %v3678_v2 }
 0x73d   :  { %v3950_v4 = vpop.f32.mrb[16].mxu0 }
 0x73e   :  { %v3244_v5 = vpop.f32.mrb[17].mxu0 }
 0x73f   :  { %v608_v6 = vpop.f32.mrb[18].mxu0 }
 0x740   :  { %v3245_v7 = vpop.f32.mrb[19].mxu0 }
 0x741   :  { %v3952_v8 = vpop.f32.mrb[16].mxu1 }
 0x742   :  { %v3507_v9 = vpack.i.bf16 %v3952_v8, %v3950_v4  ;;  %v3250_v10 = vpop.f32.mrb[17].mxu1 }
 0x743   :  { %v656_v11 = vpop.f32.mrb[18].mxu1 }
 0x744   :  { %v3251_v12 = vpop.f32.mrb[19].mxu1 }
 0x745   :  { %v703_v14 = vpop.f32.mrb[20].mxu0 }
 0x746   :  { %v704_v17 = vadd.f32 %v703_v14, %v3868_v35  ;;  %v3256_v18 = vpop.f32.mrb[21].mxu0 }
 0x747   :  { %v706_v20 = vpop.f32.mrb[22].mxu0 }
 0x748   :  { %v3257_v21 = vpop.f32.mrb[23].mxu0  ;;  %v759_v22 = vsel %vm222_vm3, %v704_v17, -inf }
 0x749   :  { %v753_v24 = vpop.f32.mrb[20].mxu1  ;;  %760 = vmax.xlane.f32.xlu0 %v759_v22 }
 0x74a   :  { %v754_v25 = vadd.f32 %v753_v24, %v3868_v35  ;;  %v3262_v27 = vpop.f32.mrb[21].mxu1 }
 0x74b   :  { %v756_v28 = vpop.f32.mrb[22].mxu1 }
 0x74c   :  { %v3263_v29 = vpop.f32.mrb[23].mxu1  ;;  %v762_v30 = vsel %vm222_vm3, %v754_v25, -inf }
 0x74d   :  { %763 = vmax.xlane.f32.xlu1 %v762_v30 }
 0x75e   :  { %783 = vrot.lane.b32.xlu1 %v3845_v23, %s3688_s27 }
 0x762   :  { %881 = vrot.lane.b32.xlu1 %v3845_v23, %s3689_s28 }
 0x766   :  { %931 = vrot.lane.b32.xlu1 %v3849_v26, %s3689_s28 }
 0x76a   :  { %929 = vrot.lane.b32.xlu1 %v3849_v26, %s3690_s29 }
 0x7d6   :  { %v761_v31 = vpop.xlane.xlu0 %760 }
 0x7d7   :  { %v765_v33 = vsub.f32 %v704_v17, %v761_v31 }
 0x7d9   :  { %v767_v34 = vmul.f32 1.442695, %v765_v33 }
 0x7da   :  { %v764_v36 = vpop.xlane.xlu1 %763 }
 0x7db   :  { %3586 = vpow2.f32 %v767_v34  ;;  %v766_v37 = vsub.f32 %v754_v25, %v764_v36 }
 0x7dd   :  { %v769_v38 = vmul.f32 1.442695, %v766_v37 }
 0x7de   :  { %v784_v39 = vpop.permute.xlu1 %783 }
 0x7df   :  { %3588 = vpow2.f32 %v769_v38  ;;  %v789_v40 = vsel %vm347_vm5, %v784_v39, 0 }
 0x7e0   :  { %3265 = vmatpush3.bf16.msra.mxu0 %v789_v40 }
 0x7e1   :  { %3276 = vmatprep.subr.bf16.mxu0 %v3678_v2 }
 0x7e2   :  { %v882_v50 = vpop.permute.xlu1 %881 }
 0x7e3   :  { %v887_v54 = vsel %vm222_vm3, %v882_v50, 0 }
 0x7e5   :  { %v3587_v41 = vpop.eup %3586 }
 0x7e6   :  { %v771_v42 = vsel %vm222_vm3, %v3587_v41, 0.0  ;;  %v932_v56 = vpop.permute.xlu1 %931 }
 0x7e7   :  { %772 = vadd.xlane.f32.xlu0 %v771_v42  ;;  %v937_v58 = vsel %vm222_vm3, %v932_v56, 0 }
 0x7e9   :  { %v3589_v43 = vpop.eup %3588 }
 0x7ea   :  { %v774_v44 = vsel %vm222_vm3, %v3589_v43, 0.0  ;;  %v930_v60 = vpop.permute.xlu1 %929 }
 0x7eb   :  { %775 = vadd.xlane.f32.xlu0 %v774_v44 }
 0x801   :  { %831 = vrot.lane.b32.xlu0 %v3849_v26, %s3688_s27 }
 0x805   :  { %879 = vrot.lane.b32.xlu0 %v3845_v23, %s3690_s29 }
 0x874   :  { %v773_v45 = vpop.xlane.xlu0 %772 }
 0x875   :  { %3590 = vrcp.f32 %v773_v45 }
 0x878   :  { %v776_v46 = vpop.xlane.xlu0 %775 }
 0x879   :  { %3592 = vrcp.f32 %v776_v46 }
 0x87c   :  { %v832_v47 = vpop.permute.xlu0 %831 }
 0x87d   :  { %v837_v48 = vsel %vm347_vm5, %v832_v47, 0  ;;  %v3542_v47 = vld [vmem:[%s4452_s6] sm:$0xff]  }
 0x87e   :  { %3271 = vmatpush3.bf16.msra.mxu1 %v837_v48  ;;  %v3543_v48 = vld [vmem:[%s4452_s6 + $0x8] sm:$0xff]  }
 0x87f   :  { %v3591_v49 = vpop.eup %3590  ;;  %3282 = vmatprep.subr.bf16.mxu1 %v3678_v2 }
 0x880   :  { %v779_v51 = vmul.f32 %v3591_v49, %v3587_v41  ;;  %v880_v59 = vpop.permute.xlu0 %879 }
 0x882   :  { %v781_v52 = vpack.c.bf16 %v779_v51, %v779_v51 }
 0x883   :  { %v3593_v53 = vpop.eup %3592 }
 0x884   :  { %v780_v55 = vmul.f32 %v3593_v53, %v3589_v43  ;;  %3267 = vmatmul.mubr.msk.bf16.vlgmr.msra.gmra.mrb[24].mxu0 %vm222_vm3, %v781_v52 }
 0x885   :  { %3277 = vmatpush3.bf16.xpose.msra.mxu0 %v887_v54  ;;  %3278 = vmatprep.mubr.msk.bf16.mxu0 %vm3679_vm0, %v3678_v2 }
 0x886   :  { %v782_v57 = vpack.c.bf16 %v780_v55, %v780_v55  ;;  %3288 = vmatprep.subr.bf16.mxu0 %v3678_v2 }
 0x888   :  { %3273 = vmatmul.mubr.msk.bf16.vlgmr.msra.gmra.mrb[24].mxu1 %vm222_vm3, %v782_v57 }
 0x889   :  { %3283 = vmatpush3.bf16.xpose.msra.mxu1 %v937_v58  ;;  %3284 = vmatprep.mubr.msk.bf16.mxu1 %vm3679_vm0, %v3678_v2 }
 0x88a   :  { %3294 = vmatprep.subr.bf16.mxu1 %v3678_v2 }
 0x88c   :  { %3279 = vmatmul.mubr.msk.bf16.vlgmr.msra.gmra.mrb[28].mxu0 %vm222_vm3, %v880_v59 }
 0x88d   :  { %3290 = vmatprep.mubr.msk.bf16.mxu0 %vm3679_vm0, %v3678_v2 }
 0x890   :  { %3285 = vmatmul.mubr.msk.bf16.vlgmr.msra.gmra.mrb[28].mxu1 %vm222_vm3, %v930_v60 }
 0x891   :  { %3296 = vmatprep.mubr.msk.bf16.mxu1 %vm3679_vm0, %v3678_v2 }
 0x957   :  { %v825_v61 = vpop.f32.mrb[24].mxu0 }
 0x958   :  { %v3268_v62 = vpop.f32.mrb[25].mxu0 }
 0x959   :  { %v828_v63 = vpop.f32.mrb[26].mxu0 }
 0x95a   :  { %v3269_v0 = vpop.f32.mrb[27].mxu0 }
 0x95b   :  { %v873_v1 = vpop.f32.mrb[24].mxu1 }
 0x95c   :  { %v3512_v3 = vpack.i.bf16 %v873_v1, %v825_v61  ;;  %v3274_v5 = vpop.f32.mrb[25].mxu1 }
 0x95d   :  { %v876_v6 = vpop.f32.mrb[26].mxu1 }
 0x95e   :  { %v3275_v7 = vpop.f32.mrb[27].mxu1 }
 0x95f   :  { %v923_v10 = vpop.f32.mrb[28].mxu0 }
 0x960   :  { %v924_v11 = vadd.f32 %v923_v10, %v3868_v35  ;;  %v3280_v12 = vpop.f32.mrb[29].mxu0 }
 0x961   :  { %v926_v14 = vpop.f32.mrb[30].mxu0 }
 0x962   :  { %v3281_v17 = vpop.f32.mrb[31].mxu0  ;;  %v979_v18 = vsel %vm222_vm3, %v924_v11, -inf }
 0x963   :  { %v973_v20 = vpop.f32.mrb[28].mxu1  ;;  %980 = vmax.xlane.f32.xlu0 %v979_v18 }
 0x964   :  { %v974_v21 = vadd.f32 %v973_v20, %v3868_v35  ;;  %v3286_v22 = vpop.f32.mrb[29].mxu1 }
 0x965   :  { %v976_v24 = vpop.f32.mrb[30].mxu1 }
 0x966   :  { %v3287_v25 = vpop.f32.mrb[31].mxu1  ;;  %v982_v27 = vsel %vm222_vm3, %v974_v21, -inf }
 0x967   :  { %983 = vmax.xlane.f32.xlu1 %v982_v27 }
 0x978   :  { %1003 = vrot.lane.b32.xlu1 %v3845_v23, %s4470_s0 }
 0x97c   :  { %3508 = vrot.lane.b32.xlu1 %v3507_v9, %s4469_s30 }
 0x980   :  { %3513 = vrot.lane.b32.xlu1 %v3512_v3, %s4467_s20 }
 0x9f0   :  { %v981_v28 = vpop.xlane.xlu0 %980 }
 0x9f1   :  { %v985_v29 = vsub.f32 %v924_v11, %v981_v28 }
 0x9f3   :  { %v987_v30 = vmul.f32 1.442695, %v985_v29 }
 0x9f4   :  { %v984_v31 = vpop.xlane.xlu1 %983 }
 0x9f5   :  { %3594 = vpow2.f32 %v987_v30  ;;  %v986_v33 = vsub.f32 %v974_v21, %v984_v31 }
 0x9f7   :  { %v989_v34 = vmul.f32 1.442695, %v986_v33 }
 0x9f8   :  { %v1004_v36 = vpop.permute.xlu1 %1003 }
 0x9f9   :  { %3596 = vpow2.f32 %v989_v34  ;;  %v1009_v23 = vsel %vm347_vm5, %v1004_v36, 0 }
 0x9fa   :  { %3289 = vmatpush3.bf16.msra.mxu0 %v1009_v23 }
 0x9fb   :  { %3300 = vmatprep.subr.bf16.mxu0 %v3678_v2 }
 0x9fc   :  { %v3509_v58 = vpop.permute.xlu1 %3508 }
 0x9fd   :  { %v3511_v60 = vunpack.i.h.bf16 %v3509_v58  ;;  %v3510_v61 = vunpack.i.l.bf16 %v3509_v58  ;;  %v3548_v58 = vld [vmem:[%s4457_s11 + $0x10] sm:$0xff]  }
 0x9ff   :  { %v3595_v37 = vpop.eup %3594  ;;  %v1124_v1 = vsel %vm222_vm3, %v3910_v19, %v3511_v60  ;;  %v1123_v3 = vsel %vm222_vm3, %v3908_v13, %v3510_v61  ;;  %v2996_v13 = vld [vmem:[%s4453_s7] ss:$0 sm:$0xff] }
 0xa00   :  { %v991_v4 = vsel %vm222_vm3, %v3595_v37, 0.0  ;;  %v3514_v59 = vpop.permute.xlu1 %3513  ;;  %v3000_v60 = vld [vmem:[%s4456_s10] ss:$0 sm:$0xff] }
 0xa01   :  { %992 = vadd.xlane.f32.xlu0 %v991_v4  ;;  %v3516_v62 = vunpack.i.h.bf16 %v3514_v59  ;;  %v3515_v63 = vunpack.i.l.bf16 %v3514_v59  ;;  %v3549_v59 = vld [vmem:[%s4457_s11 + $0x18] sm:$0xff]  }
 0xa03   :  { %v3597_v8 = vpop.eup %3596  ;;  %v1126_v7 = vsel %vm88_vm1, %v1124_v1, %v3516_v62  ;;  %v1125_v10 = vsel %vm88_vm1, %v1123_v3, %v3515_v63 }
 0xa04   :  { %v994_v9 = vsel %vm222_vm3, %v3597_v8, 0.0 }
 0xa05   :  { %995 = vadd.xlane.f32.xlu0 %v994_v9 }
 0xa1b   :  { %1051 = vrot.lane.b32.xlu0 %v3849_v26, %s4470_s0 }
 0xa8e   :  { %v993_v38 = vpop.xlane.xlu0 %992 }
 0xa8f   :  { %3598 = vrcp.f32 %v993_v38 }
 0xa92   :  { %v996_v39 = vpop.xlane.xlu0 %995 }
 0xa93   :  { %3600 = vrcp.f32 %v996_v39 }
 0xa96   :  { %v1052_v40 = vpop.permute.xlu0 %1051 }
 0xa97   :  { %v1057_v41 = vsel %vm347_vm5, %v1052_v40, 0 }
 0xa98   :  { %3295 = vmatpush3.bf16.msra.mxu1 %v1057_v41 }
 0xa99   :  { %v3599_v42 = vpop.eup %3598  ;;  %3308 = vmatprep.subr.bf16.mxu1 %v3678_v2 }
 0xa9a   :  { %v999_v43 = vmul.f32 %v3599_v42, %v3595_v37 }
 0xa9c   :  { %v1001_v44 = vpack.c.bf16 %v999_v43, %v999_v43  ;;  %v1225_v43 = vsub.s32 0, %v3865_v32 }
 0xa9d   :  { %v3601_v45 = vpop.eup %3600 }
 0xa9e   :  { %v1000_v46 = vmul.f32 %v3601_v45, %v3597_v8  ;;  %3291 = vmatmul.mubr.msk.bf16.vlgmr.msra.gmra.mrb[32].mxu0 %vm222_vm3, %v1001_v44  ;;  %v3545_v8 = vld [vmem:[%s4455_s9 + $0x8] sm:$0xff]   ;;  %v4060_v44 = vld [vmem:[%s4454_s8] sm:$0xf] }
 0xa9f   :  { %3304 = vmatprep.mubr.msk.bf16.mxu0 %vm3679_vm0, %v3678_v2  ;;  %3301 = vmatpush3.bf16.msra.mxu0 %v3542_v47  ;;  %v1226_v45 = vrot.slane %v4060_v44, %v1225_v43 }
 0xaa0   :  { %v1002_v26 = vpack.c.bf16 %v1000_v46, %v1000_v46  ;;  %3302 = vmatprep.subr.bf16.mxu0 %v3678_v2  ;;  %v1231_v46 = vsub.s32 1, %v3865_v32 }
 0xaa2   :  { %3297 = vmatmul.mubr.msk.bf16.vlgmr.msra.gmra.mrb[32].mxu1 %vm222_vm3, %v1002_v26 }
 0xaa3   :  { %3312 = vmatprep.mubr.msk.bf16.mxu1 %vm3679_vm0, %v3678_v2  ;;  %3303 = vmatpush3.bf16.msra.mxu0 %v3543_v48 }
 0xaa4   :  { %3342 = vmatprep.subr.bf16.mxu0 %v3678_v2 }
 0xb71   :  { %v1045_v49 = vpop.f32.mrb[32].mxu0 }
 0xb72   :  { %v3292_v50 = vpop.f32.mrb[33].mxu0 }
 0xb73   :  { %v1048_v51 = vpop.f32.mrb[34].mxu0 }
 0xb74   :  { %v3293_v52 = vpop.f32.mrb[35].mxu0  ;;  %v1232_v51 = vrot.slane %v4060_v44, %v1231_v46 }
 0xb75   :  { %v1093_v53 = vpop.f32.mrb[32].mxu1 }
 0xb76   :  { %v3517_v54 = vpack.i.bf16 %v1093_v53, %v1045_v49  ;;  %v3298_v55 = vpop.f32.mrb[33].mxu1 }
 0xb77   :  { %v1096_v56 = vpop.f32.mrb[34].mxu1  ;;  %v3546_v55 = vld [vmem:[%s4457_s11] sm:$0xff]  }
 0xb78   :  { %v3299_v57 = vpop.f32.mrb[35].mxu1  ;;  %3518 = vrot.lane.b32.xlu0 %v3517_v54, %s4468_s21 }
 0xb79   :  { %v3547_v57 = vld [vmem:[%s4457_s11 + $0x8] sm:$0xff]  }
 0xbea   :  { %v3519_v0 = vpop.permute.xlu0 %3518 }
 0xbeb   :  { %v3521_v5 = vunpack.i.h.bf16 %v3519_v0  ;;  %v3520_v6 = vunpack.i.l.bf16 %v3519_v0 }
 0xbed   :  { %v1129_v11 = vsel %vm1127_vm6, %v1126_v7, %v3521_v5  ;;  %v1128_v12 = vsel %vm1127_vm6, %v1125_v10, %v3520_v6  ;;  %v3004_v10 = vld [vmem:[%s4458_s12] ss:$0 sm:$0xff] }
 0xbee   :  { %v1130_v14 = vpack.c.bf16 %v1129_v11, %v1128_v12 }
 0xbf0   :  { %3305 = vmatmul.mubr.msk.bf16.vlgmr.msra.gmra.mrb[36].mxu0 %vm172_vm2, %v1130_v14 }
 0xbf1   :  { %3344 = vmatprep.mubr.msk.bf16.mxu0 %vm3679_vm0, %v3678_v2 }
 0xcc3   :  { %v1187_v19 = vpop.f32.mrb[36].mxu0 }
 0xcc4   :  { %v1188_v17 = vadd.f32 %v2996_v13, %v1187_v19  ;;  %v3306_v18 = vpop.f32.mrb[37].mxu0 }
 0xcc5   :  { %v1190_v20 = vpop.f32.mrb[38].mxu0 }
 0xcc6   :  { %v1191_v21 = vadd.f32 %v2996_v13, %v1190_v20  ;;  %v3307_v22 = vpop.f32.mrb[39].mxu0  ;;  %v1194_v24 = vadd.f32 %v1188_v17, %v3833_v15 }
 0xcc8   :  { %v1196_v25 = vsel %vm172_vm2, %v1194_v24, 0.0  ;;  %v1195_v27 = vadd.f32 %v1191_v21, %v3835_v16  ;;  %v3544_v16 = vld [vmem:[%s4455_s9] sm:$0xff]  }
 0xcc9   :  { %1197 = vadd.xlane.f32.xlu1 %v1196_v25  ;;  %3309 = vmatpush3.bf16.msra.mxu1 %v3544_v16 }
 0xcca   :  { %v1199_v28 = vsel %vm172_vm2, %v1195_v27, 0.0  ;;  %3310 = vmatprep.subr.bf16.mxu1 %v3678_v2 }
 0xccb   :  { %1200 = vadd.xlane.f32.xlu0 %v1199_v28 }
 0xccd   :  { %3311 = vmatpush3.bf16.msra.mxu1 %v3545_v8 }
 0xcce   :  { %3316 = vmatprep.subr.bf16.mxu1 %v3678_v2 }
 0xd56   :  { %v1198_v29 = vpop.xlane.xlu1 %1197 }
 0xd57   :  { %v1203_v30 = vmul.f32 0.03125, %v1198_v29 }
 0xd58   :  { %v1201_v31 = vpop.xlane.xlu0 %1200 }
 0xd59   :  { %v1205_v33 = vsub.f32 %v1194_v24, %v1203_v30  ;;  %v1204_v34 = vmul.f32 0.03125, %v1201_v31 }
 0xd5b   :  { %v1206_v36 = vsub.f32 %v1195_v27, %v1204_v34  ;;  %v1207_v23 = vmul.f32 %v1205_v33, %v1205_v33 }
 0xd5d   :  { %v1209_v37 = vsel %vm172_vm2, %v1207_v23, 0.0  ;;  %v1208_v4 = vmul.f32 %v1206_v36, %v1206_v36  ;;  %v3550_v23 = vld [vmem:[%s4450_s4 + $0x10] sm:$0xff]  }
 0xd5e   :  { %1210 = vadd.xlane.f32.xlu0 %v1209_v37  ;;  %v3551_v37 = vld [vmem:[%s4450_s4 + $0x18] sm:$0xff]  }
 0xd5f   :  { %v1212_v15 = vsel %vm172_vm2, %v1208_v4, 0.0 }
 0xd60   :  { %1213 = vadd.xlane.f32.xlu1 %v1212_v15 }
 0xdeb   :  { %v1211_v9 = vpop.xlane.xlu0 %1210 }
 0xdec   :  { %v1215_v38 = vmul.f32 0.03125, %v1211_v9 }
 0xded   :  { %v1214_v39 = vpop.xlane.xlu1 %1213 }
 0xdee   :  { %v1217_v40 = vadd.f32 1e-05, %v1215_v38  ;;  %v1216_v41 = vmul.f32 0.03125, %v1214_v39  ;;  %v1420_v39 = vsub.s32 2, %v3865_v32 }
 0xdf0   :  { %3602 = vrsqrt.f32 %v1217_v40  ;;  %v1218_v42 = vadd.f32 1e-05, %v1216_v41  ;;  %v1421_v40 = vrot.slane %v4060_v44, %v1420_v39  ;;  %v1426_v41 = vsub.s32 3, %v3865_v32 }
 0xdf2   :  { %3604 = vrsqrt.f32 %v1218_v42 }
 0xdfa   :  { %v3603_v26 = vpop.eup %3602 }
 0xdfb   :  { %v1221_v47 = vmul.f32 %v3603_v26, %v1205_v33 }
 0xdfc   :  { %v3605_v48 = vpop.eup %3604 }
 0xdfd   :  { %v1227_v49 = vmul.f32 %v1226_v45, %v1221_v47  ;;  %v1222_v50 = vmul.f32 %v3605_v48, %v1206_v36 }
 0xdff   :  { %v1228_v52 = vmul.f32 %v1226_v45, %v1222_v50  ;;  %v1233_v53 = vadd.f32 %v1232_v51, %v1227_v49  ;;  %v1427_v49 = vrot.slane %v4060_v44, %v1426_v41 }
 0xe01   :  { %v1234_v54 = vadd.f32 %v1232_v51, %v1228_v52 }
 0xe03   :  { %v1235_v56 = vpack.c.bf16 %v1234_v54, %v1233_v53 }
 0xe05   :  { %3313 = vmatmul.mubr.msk.bf16.vlgmr.msra.gmra.mrb[36].mxu1 %vm172_vm2, %v1235_v56 }
 0xe06   :  { %3317 = vmatpush3.bf16.msra.mxu1 %v3546_v55  ;;  %3324 = vmatprep.mubr.msk.bf16.mxu1 %vm3679_vm0, %v3678_v2 }
 0xe07   :  { %3318 = vmatprep.subr.bf16.mxu1 %v3678_v2 }
 0xe0a   :  { %3319 = vmatpush3.bf16.msra.mxu1 %v3547_v57 }
 0xe0b   :  { %3320 = vmatprep.subr.bf16.mxu1 %v3678_v2 }
 0xe0e   :  { %3321 = vmatpush3.bf16.msra.mxu1 %v3548_v58 }
 0xe0f   :  { %3322 = vmatprep.subr.bf16.mxu1 %v3678_v2 }
 0xe12   :  { %3323 = vmatpush3.bf16.msra.mxu1 %v3549_v59 }
 0xe13   :  { %3328 = vmatprep.subr.bf16.mxu1 %v3678_v2 }
 0xed8   :  { %v1296_v61 = vpop.f32.mrb[36].mxu1 }
 0xed9   :  { %v1297_v62 = vadd.f32 %v3000_v60, %v1296_v61  ;;  %v3314_v63 = vpop.f32.mrb[37].mxu1 }
 0xeda   :  { %v1299_v0 = vpop.f32.mrb[38].mxu1 }
 0xedb   :  { %v1300_v1 = vadd.f32 %v3000_v60, %v1299_v0  ;;  %v3315_v3 = vpop.f32.mrb[39].mxu1  ;;  %v1303_v5 = vmax.f32 %v1297_v62, 0.0 }
 0xedd   :  { %v1304_v6 = vmax.f32 %v1300_v1, 0.0 }
 0xedf   :  { %v1305_v7 = vpack.c.bf16 %v1304_v6, %v1303_v5 }
 0xee1   :  { %3325 = vmatmul.mubr.msk.bf16.vlgmr.msra.gmra.mrb[40].mxu1 %vm1345_vm7, %v1305_v7 }
 0xee2   :  { %3332 = vmatprep.mubr.msk.bf16.mxu1 %vm3679_vm0, %v3678_v2  ;;  %3329 = vmatpush3.bf16.msra.mxu1 %v3550_v23 }
 0xee3   :  { %3330 = vmatprep.subr.bf16.mxu1 %v3678_v2 }
 0xee6   :  { %3331 = vmatpush3.bf16.msra.mxu1 %v3551_v37 }
 0xee7   :  { %3336 = vmatprep.subr.bf16.mxu1 %v3678_v2 }
 0xfb4   :  { %v1383_v11 = vpop.f32.mrb[40].mxu1 }
 0xfb5   :  { %v1384_v12 = vadd.f32 %v3004_v10, %v1383_v11  ;;  %v3326_v14 = vpop.f32.mrb[41].mxu1 }
 0xfb6   :  { %v1386_v13 = vpop.f32.mrb[42].mxu1 }
 0xfb7   :  { %v1387_v19 = vadd.f32 %v3004_v10, %v1386_v13  ;;  %v3327_v17 = vpop.f32.mrb[43].mxu1  ;;  %v1390_v18 = vadd.f32 %v1384_v12, %v1233_v53 }
 0xfb9   :  { %v1392_v20 = vsel %vm172_vm2, %v1390_v18, 0.0  ;;  %v1391_v21 = vadd.f32 %v1387_v19, %v1234_v54  ;;  %v3020_v54 = vld [vmem:[%s4451_s5 + $0x1] ss:$0 sm:$0xff]  ;;  %s4480_s5 = smov 40  }
 0xfba   :  { %1393 = vadd.xlane.f32.xlu0 %v1392_v20 }
 0xfbb   :  { %v1395_v22 = vsel %vm172_vm2, %v1391_v21, 0.0 }
 0xfbc   :  { %1396 = vadd.xlane.f32.xlu1 %v1395_v22 }
0x1047   :  { %v1394_v24 = vpop.xlane.xlu0 %1393 }
0x1048   :  { %v1398_v25 = vmul.f32 0.03125, %v1394_v24 }
0x1049   :  { %v1397_v27 = vpop.xlane.xlu1 %1396 }
0x104a   :  { %v1400_v28 = vsub.f32 %v1390_v18, %v1398_v25  ;;  %v1399_v29 = vmul.f32 0.03125, %v1397_v27 }
0x104c   :  { %v1401_v30 = vsub.f32 %v1391_v21, %v1399_v29  ;;  %v1402_v31 = vmul.f32 %v1400_v28, %v1400_v28 }
0x104e   :  { %v1404_v33 = vsel %vm172_vm2, %v1402_v31, 0.0  ;;  %v1403_v34 = vmul.f32 %v1401_v30, %v1401_v30 }
0x104f   :  { %1405 = vadd.xlane.f32.xlu0 %v1404_v33 }
0x1050   :  { %v1407_v36 = vsel %vm172_vm2, %v1403_v34, 0.0 }
0x1051   :  { %1408 = vadd.xlane.f32.xlu1 %v1407_v36 }
0x10dc   :  { %v1406_v4 = vpop.xlane.xlu0 %1405 }
0x10dd   :  { %v1410_v15 = vmul.f32 0.03125, %v1406_v4 }
0x10de   :  { %v1409_v16 = vpop.xlane.xlu1 %1408 }
0x10df   :  { %v1412_v8 = vadd.f32 1e-05, %v1410_v15  ;;  %v1411_v9 = vmul.f32 0.03125, %v1409_v16 }
0x10e1   :  { %3606 = vrsqrt.f32 %v1412_v8  ;;  %v1413_v38 = vadd.f32 1e-05, %v1411_v9 }
0x10e3   :  { %3608 = vrsqrt.f32 %v1413_v38 }
0x10eb   :  { %v3607_v42 = vpop.eup %3606 }
0x10ec   :  { %v1416_v45 = vmul.f32 %v3607_v42, %v1400_v28 }
0x10ed   :  { %v3609_v26 = vpop.eup %3608 }
0x10ee   :  { %v1422_v47 = vmul.f32 %v1421_v40, %v1416_v45  ;;  %v1417_v48 = vmul.f32 %v3609_v26, %v1401_v30 }
0x10f0   :  { %v1423_v50 = vmul.f32 %v1421_v40, %v1417_v48  ;;  %v4117_v51 = vadd.f32 %v1427_v49, %v1422_v47 }
0x10f2   :  { %v4119_v52 = vadd.f32 %v1427_v49, %v1423_v50 }
0x10f4   :  { %v1442_v53 = vpack.c.bf16 %v4119_v52, %v4117_v51 }
0x10f6   :  { %3333 = vmatmul.mubr.msk.bf16.vlgmr.msra.gmra.mrb[44].mxu1 %vm172_vm2, %v1442_v53 }
0x10f7   :  { %3338 = vmatprep.mubr.msk.bf16.mxu1 %vm3679_vm0, %v3678_v2 }
0x11c9   :  { %v1500_v55 = vpop.f32.mrb[44].mxu1 }
0x11ca   :  { %v1501_v56 = vadd.f32 %v3020_v54, %v1500_v55  ;;  %v3334_v44 = vpop.f32.mrb[45].mxu1 }
0x11cb   :  { %v1503_v57 = vpop.f32.mrb[46].mxu1 }
0x11cc   :  { %v4129_v58 = vpack.c.bf16 %v1501_v56, %v1501_v56  ;;  %v1504_v59 = vadd.f32 %v3020_v54, %v1503_v57  ;;  %v3335_v60 = vpop.f32.mrb[47].mxu1 }
0x11ce   :  { %v4131_v61 = vpack.c.bf16 %v1504_v59, %v1504_v59  ;;  %1510 = vrot.lane.b32.xlu0 %v4129_v58, %s3680_s2 }
0x11d0   :  { %1559 = vrot.lane.b32.xlu1 %v4131_v61, %s3680_s2  ;;  %s4481_s2 = smov 8  }
0x1240   :  { %v1511_v62 = vpop.permute.xlu0 %1510 }
0x1241   :  { %v1516_v63 = vsel %vm222_vm3, %v1511_v62, 0 }
0x1242   :  { %3337 = vmatpush3.bf16.xpose.msra.mxu1 %v1516_v63  ;;  %v1560_v0 = vpop.permute.xlu1 %1559 }
0x1243   :  { %v1565_v1 = vsel %vm222_vm3, %v1560_v0, 0  ;;  %3348 = vmatprep.subr.bf16.mxu1 %v3678_v2 }
0x1244   :  { %3343 = vmatpush3.bf16.xpose.msra.mxu0 %v1565_v1 }
0x1245   :  { %3354 = vmatprep.subr.bf16.mxu0 %v3678_v2 }
0x1249   :  { %3339 = vmatmul.mubr.msk.bf16.vlgmr.msra.gmra.mrb[48].mxu1 %vm222_vm3, %v4129_v58 }
0x124a   :  { %3350 = vmatprep.mubr.msk.bf16.mxu1 %vm3679_vm0, %v3678_v2 }
0x124b   :  { %3345 = vmatmul.mubr.msk.bf16.vlgmr.msra.gmra.mrb[40].mxu0 %vm222_vm3, %v4131_v61 }
0x124c   :  { %3356 = vmatprep.mubr.msk.bf16.mxu0 %vm3679_vm0, %v3678_v2 }
0x131c   :  { %v1552_v3 = vpop.f32.mrb[48].mxu1 }
0x131d   :  { %v1553_v5 = vadd.f32 %v1552_v3, %v3868_v35  ;;  %v3340_v6 = vpop.f32.mrb[49].mxu1 }
0x131e   :  { %v1555_v7 = vpop.f32.mrb[50].mxu1  ;;  %v1601_v10 = vpop.f32.mrb[40].mxu0 }
0x131f   :  { %v1602_v11 = vadd.f32 %v1601_v10, %v3868_v35  ;;  %v3341_v12 = vpop.f32.mrb[51].mxu1  ;;  %v3346_v14 = vpop.f32.mrb[41].mxu0  ;;  %v1607_v13 = vsel %vm222_vm3, %v1553_v5, -inf }
0x1320   :  { %1608 = vmax.xlane.f32.xlu1 %v1607_v13  ;;  %v1604_v19 = vpop.f32.mrb[42].mxu0 }
0x1321   :  { %v3347_v17 = vpop.f32.mrb[43].mxu0  ;;  %v1610_v18 = vsel %vm222_vm3, %v1602_v11, -inf }
0x1322   :  { %1611 = vmax.xlane.f32.xlu0 %v1610_v18 }
0x1331   :  { %1679 = vrot.lane.b32.xlu1 %v4131_v61, %s3682_s23 }
0x1338   :  { %1631 = vrot.lane.b32.xlu0 %v4129_v58, %s3682_s23  ;;  %s4482_s23 = smov 16  }
0x13ad   :  { %v1609_v20 = vpop.xlane.xlu1 %1608 }
0x13ae   :  { %v1613_v21 = vsub.f32 %v1553_v5, %v1609_v20 }
0x13af   :  { %v1612_v22 = vpop.xlane.xlu0 %1611 }
0x13b0   :  { %v1615_v24 = vmul.f32 1.442695, %v1613_v21  ;;  %v1614_v25 = vsub.f32 %v1602_v11, %v1612_v22 }
0x13b1   :  { %v1680_v27 = vpop.permute.xlu1 %1679 }
0x13b2   :  { %3610 = vpow2.f32 %v1615_v24  ;;  %v1617_v28 = vmul.f32 1.442695, %v1614_v25  ;;  %v1685_v29 = vsel %vm347_vm5, %v1680_v27, 0 }
0x13b3   :  { %3355 = vmatpush3.bf16.msra.mxu0 %v1685_v29  ;;  %v1632_v30 = vpop.permute.xlu0 %1631 }
0x13b4   :  { %3612 = vpow2.f32 %v1617_v28  ;;  %v1637_v31 = vsel %vm347_vm5, %v1632_v30, 0  ;;  %3366 = vmatprep.subr.bf16.mxu0 %v3678_v2 }
0x13b5   :  { %3349 = vmatpush3.bf16.msra.mxu1 %v1637_v31 }
0x13b6   :  { %3360 = vmatprep.subr.bf16.mxu1 %v3678_v2 }
0x13bc   :  { %v3611_v33 = vpop.eup %3610 }
0x13bd   :  { %v1619_v34 = vsel %vm222_vm3, %v3611_v33, 0.0 }
0x13be   :  { %v3613_v36 = vpop.eup %3612  ;;  %1620 = vadd.xlane.f32.xlu0 %v1619_v34 }
0x13bf   :  { %v1622_v23 = vsel %vm222_vm3, %v3613_v36, 0.0 }
0x13c0   :  { %1623 = vadd.xlane.f32.xlu1 %v1622_v23 }
0x13d1   :  { %1729 = vrot.lane.b32.xlu1 %v4129_v58, %s3683_s18 }
0x13d4   :  { %1779 = vrot.lane.b32.xlu0 %v4131_v61, %s3683_s18 }
0x13d5   :  { %1727 = vrot.lane.b32.xlu1 %v4129_v58, %s3684_s24 }
0x13d8   :  { %1777 = vrot.lane.b32.xlu0 %v4131_v61, %s3684_s24 }
0x144b   :  { %v1621_v37 = vpop.xlane.xlu0 %1620 }
0x144c   :  { %3614 = vrcp.f32 %v1621_v37 }
0x144d   :  { %v1624_v4 = vpop.xlane.xlu1 %1623 }
0x144e   :  { %3616 = vrcp.f32 %v1624_v4 }
0x144f   :  { %v1780_v42 = vpop.permute.xlu0 %1779 }
0x1450   :  { %v1785_v47 = vsel %vm222_vm3, %v1780_v42, 0 }
0x1451   :  { %v1730_v9 = vpop.permute.xlu1 %1729 }
0x1452   :  { %v1735_v45 = vsel %vm222_vm3, %v1730_v9, 0 }
0x1453   :  { %v1778_v49 = vpop.permute.xlu0 %1777 }
0x1455   :  { %v1728_v48 = vpop.permute.xlu1 %1727 }
0x1456   :  { %v3615_v15 = vpop.eup %3614 }
0x1457   :  { %v1627_v16 = vmul.f32 %v3615_v15, %v3611_v33 }
0x1458   :  { %v3617_v8 = vpop.eup %3616 }
0x1459   :  { %v1628_v38 = vmul.f32 %v3617_v8, %v3613_v36  ;;  %v1629_v40 = vpack.c.bf16 %v1627_v16, %v1627_v16 }
0x145b   :  { %3351 = vmatmul.mubr.msk.bf16.vlgmr.msra.gmra.mrb[52].mxu1 %vm222_vm3, %v1629_v40  ;;  %v1630_v26 = vpack.c.bf16 %v1628_v38, %v1628_v38 }
0x145c   :  { %3361 = vmatpush3.bf16.xpose.msra.mxu1 %v1735_v45  ;;  %3362 = vmatprep.mubr.msk.bf16.mxu1 %vm3679_vm0, %v3678_v2 }
0x145d   :  { %3357 = vmatmul.mubr.msk.bf16.vlgmr.msra.gmra.mrb[44].mxu0 %vm222_vm3, %v1630_v26  ;;  %3372 = vmatprep.subr.bf16.mxu1 %v3678_v2 }
0x145e   :  { %3367 = vmatpush3.bf16.xpose.msra.mxu0 %v1785_v47  ;;  %3368 = vmatprep.mubr.msk.bf16.mxu0 %vm3679_vm0, %v3678_v2 }
0x145f   :  { %3378 = vmatprep.subr.bf16.mxu0 %v3678_v2 }
0x1463   :  { %3363 = vmatmul.mubr.msk.bf16.vlgmr.msra.gmra.mrb[56].mxu1 %vm222_vm3, %v1728_v48 }
0x1464   :  { %3374 = vmatprep.mubr.msk.bf16.mxu1 %vm3679_vm0, %v3678_v2 }
0x1465   :  { %3369 = vmatmul.mubr.msk.bf16.vlgmr.msra.gmra.mrb[48].mxu0 %vm222_vm3, %v1778_v49 }
0x1466   :  { %3380 = vmatprep.mubr.msk.bf16.mxu0 %vm3679_vm0, %v3678_v2 }
0x152e   :  { %v4187_v50 = vpop.f32.mrb[52].mxu1 }
0x152f   :  { %v3352_v53 = vpop.f32.mrb[53].mxu1 }
0x1530   :  { %v1676_v54 = vpop.f32.mrb[54].mxu1  ;;  %v4189_v55 = vpop.f32.mrb[44].mxu0 }
0x1531   :  { %v3353_v56 = vpop.f32.mrb[55].mxu1  ;;  %v3358_v44 = vpop.f32.mrb[45].mxu0 }
0x1532   :  { %v1724_v57 = vpop.f32.mrb[46].mxu0 }
0x1533   :  { %v3359_v59 = vpop.f32.mrb[47].mxu0 }
0x1536   :  { %v1771_v60 = vpop.f32.mrb[56].mxu1 }
0x1537   :  { %v1772_v62 = vadd.f32 %v1771_v60, %v3868_v35  ;;  %v3364_v63 = vpop.f32.mrb[57].mxu1 }
0x1538   :  { %v1774_v0 = vpop.f32.mrb[58].mxu1  ;;  %v1821_v1 = vpop.f32.mrb[48].mxu0 }
0x1539   :  { %v1822_v3 = vadd.f32 %v1821_v1, %v3868_v35  ;;  %v3365_v5 = vpop.f32.mrb[59].mxu1  ;;  %v3370_v6 = vpop.f32.mrb[49].mxu0  ;;  %v1827_v7 = vsel %vm222_vm3, %v1772_v62, -inf }
0x153a   :  { %1828 = vmax.xlane.f32.xlu1 %v1827_v7  ;;  %v1824_v10 = vpop.f32.mrb[50].mxu0 }
0x153b   :  { %v3371_v11 = vpop.f32.mrb[51].mxu0  ;;  %v1830_v12 = vsel %vm222_vm3, %v1822_v3, -inf }
0x153c   :  { %1831 = vmax.xlane.f32.xlu0 %v1830_v12 }
0x154b   :  { %1899 = vrot.lane.b32.xlu1 %v4131_v61, %s3685_s25 }
0x1552   :  { %1851 = vrot.lane.b32.xlu0 %v4129_v58, %s3685_s25 }
0x15c7   :  { %v1829_v14 = vpop.xlane.xlu1 %1828 }
0x15c8   :  { %v1833_v13 = vsub.f32 %v1772_v62, %v1829_v14 }
0x15c9   :  { %v1832_v19 = vpop.xlane.xlu0 %1831 }
0x15ca   :  { %v1835_v17 = vmul.f32 1.442695, %v1833_v13  ;;  %v1834_v18 = vsub.f32 %v1822_v3, %v1832_v19 }
0x15cb   :  { %v1900_v20 = vpop.permute.xlu1 %1899 }
0x15cc   :  { %3618 = vpow2.f32 %v1835_v17  ;;  %v1837_v21 = vmul.f32 1.442695, %v1834_v18  ;;  %v1905_v22 = vsel %vm347_vm5, %v1900_v20, 0 }
0x15cd   :  { %3379 = vmatpush3.bf16.msra.mxu0 %v1905_v22  ;;  %v1852_v24 = vpop.permute.xlu0 %1851 }
0x15ce   :  { %3620 = vpow2.f32 %v1837_v21  ;;  %v1857_v25 = vsel %vm347_vm5, %v1852_v24, 0  ;;  %3390 = vmatprep.subr.bf16.mxu0 %v3678_v2 }
0x15cf   :  { %3373 = vmatpush3.bf16.msra.mxu1 %v1857_v25 }
0x15d0   :  { %3384 = vmatprep.subr.bf16.mxu1 %v3678_v2 }
0x15d6   :  { %v3619_v27 = vpop.eup %3618 }
0x15d7   :  { %v1839_v28 = vsel %vm222_vm3, %v3619_v27, 0.0 }
0x15d8   :  { %v3621_v29 = vpop.eup %3620  ;;  %1840 = vadd.xlane.f32.xlu0 %v1839_v28 }
0x15d9   :  { %v1842_v30 = vsel %vm222_vm3, %v3621_v29, 0.0 }
0x15da   :  { %1843 = vadd.xlane.f32.xlu1 %v1842_v30 }
0x15eb   :  { %1949 = vrot.lane.b32.xlu1 %v4129_v58, %s3686_s3 }
0x15ee   :  { %1999 = vrot.lane.b32.xlu0 %v4131_v61, %s3686_s3 }
0x15ef   :  { %1947 = vrot.lane.b32.xlu1 %v4129_v58, %s3687_s26 }
0x15f2   :  { %1997 = vrot.lane.b32.xlu0 %v4131_v61, %s3687_s26  ;;  %s4483_s26 = smov 24  }
0x1665   :  { %v1841_v31 = vpop.xlane.xlu0 %1840 }
0x1666   :  { %3622 = vrcp.f32 %v1841_v31 }
0x1667   :  { %v1844_v33 = vpop.xlane.xlu1 %1843 }
0x1668   :  { %3624 = vrcp.f32 %v1844_v33 }
0x1669   :  { %v2000_v16 = vpop.permute.xlu0 %1999 }
0x166a   :  { %v2005_v38 = vsel %vm222_vm3, %v2000_v16, 0 }
0x166b   :  { %v1950_v37 = vpop.permute.xlu1 %1949 }
0x166c   :  { %v1955_v8 = vsel %vm222_vm3, %v1950_v37, 0 }
0x166d   :  { %v1998_v42 = vpop.permute.xlu0 %1997 }
0x166f   :  { %v1948_v40 = vpop.permute.xlu1 %1947 }
0x1670   :  { %v3623_v34 = vpop.eup %3622 }
0x1671   :  { %v1847_v36 = vmul.f32 %v3623_v34, %v3619_v27 }
0x1672   :  { %v3625_v23 = vpop.eup %3624 }
0x1673   :  { %v1848_v4 = vmul.f32 %v3625_v23, %v3621_v29  ;;  %v1849_v15 = vpack.c.bf16 %v1847_v36, %v1847_v36 }
0x1675   :  { %3375 = vmatmul.mubr.msk.bf16.vlgmr.msra.gmra.mrb[60].mxu1 %vm222_vm3, %v1849_v15  ;;  %v1850_v9 = vpack.c.bf16 %v1848_v4, %v1848_v4 }
0x1676   :  { %3385 = vmatpush3.bf16.xpose.msra.mxu1 %v1955_v8  ;;  %3386 = vmatprep.mubr.msk.bf16.mxu1 %vm3679_vm0, %v3678_v2 }
0x1677   :  { %3381 = vmatmul.mubr.msk.bf16.vlgmr.msra.gmra.mrb[52].mxu0 %vm222_vm3, %v1850_v9  ;;  %3396 = vmatprep.subr.bf16.mxu1 %v3678_v2 }
0x1678   :  { %3391 = vmatpush3.bf16.xpose.msra.mxu0 %v2005_v38  ;;  %3392 = vmatprep.mubr.msk.bf16.mxu0 %vm3679_vm0, %v3678_v2 }
0x1679   :  { %3402 = vmatprep.subr.bf16.mxu0 %v3678_v2 }
0x167d   :  { %3387 = vmatmul.mubr.msk.bf16.vlgmr.msra.gmra.mrb[64].mxu1 %vm222_vm3, %v1948_v40 }
0x167e   :  { %3398 = vmatprep.mubr.msk.bf16.mxu1 %vm3679_vm0, %v3678_v2 }
0x167f   :  { %3393 = vmatmul.mubr.msk.bf16.vlgmr.msra.gmra.mrb[56].mxu0 %vm222_vm3, %v1998_v42 }
0x1680   :  { %3404 = vmatprep.mubr.msk.bf16.mxu0 %vm3679_vm0, %v3678_v2 }
0x1748   :  { %v4229_v45 = vpop.f32.mrb[60].mxu1 }
0x1749   :  { %v3376_v26 = vpop.f32.mrb[61].mxu1 }
0x174a   :  { %v1896_v47 = vpop.f32.mrb[62].mxu1  ;;  %v4231_v48 = vpop.f32.mrb[52].mxu0 }
0x174b   :  { %v3522_v49 = vpack.i.bf16 %v4231_v48, %v4229_v45  ;;  %v3377_v53 = vpop.f32.mrb[63].mxu1  ;;  %v3382_v54 = vpop.f32.mrb[53].mxu0 }
0x174c   :  { %v1944_v56 = vpop.f32.mrb[54].mxu0 }
0x174d   :  { %v3383_v44 = vpop.f32.mrb[55].mxu0 }
0x1750   :  { %v1991_v57 = vpop.f32.mrb[64].mxu1 }
0x1751   :  { %v1992_v59 = vadd.f32 %v1991_v57, %v3868_v35  ;;  %v3388_v60 = vpop.f32.mrb[65].mxu1 }
0x1752   :  { %v1994_v62 = vpop.f32.mrb[66].mxu1  ;;  %v2041_v63 = vpop.f32.mrb[56].mxu0 }
0x1753   :  { %v2042_v0 = vadd.f32 %v2041_v63, %v3868_v35  ;;  %v3389_v1 = vpop.f32.mrb[67].mxu1  ;;  %v3394_v3 = vpop.f32.mrb[57].mxu0  ;;  %v2047_v5 = vsel %vm222_vm3, %v1992_v59, -inf }
0x1754   :  { %2048 = vmax.xlane.f32.xlu1 %v2047_v5  ;;  %v2044_v6 = vpop.f32.mrb[58].mxu0 }
0x1755   :  { %v3395_v7 = vpop.f32.mrb[59].mxu0  ;;  %v2050_v10 = vsel %vm222_vm3, %v2042_v0, -inf }
0x1756   :  { %2051 = vmax.xlane.f32.xlu0 %v2050_v10 }
0x1765   :  { %2119 = vrot.lane.b32.xlu1 %v4131_v61, %s3688_s27 }
0x176c   :  { %2071 = vrot.lane.b32.xlu0 %v4129_v58, %s3688_s27 }
0x17e1   :  { %v2049_v11 = vpop.xlane.xlu1 %2048 }
0x17e2   :  { %v2053_v12 = vsub.f32 %v1992_v59, %v2049_v11 }
0x17e3   :  { %v2052_v14 = vpop.xlane.xlu0 %2051 }
0x17e4   :  { %v2055_v13 = vmul.f32 1.442695, %v2053_v12  ;;  %v2054_v19 = vsub.f32 %v2042_v0, %v2052_v14 }
0x17e5   :  { %v2120_v17 = vpop.permute.xlu1 %2119 }
0x17e6   :  { %3626 = vpow2.f32 %v2055_v13  ;;  %v2057_v18 = vmul.f32 1.442695, %v2054_v19  ;;  %v2125_v20 = vsel %vm347_vm5, %v2120_v17, 0 }
0x17e7   :  { %3403 = vmatpush3.bf16.msra.mxu0 %v2125_v20  ;;  %v2072_v21 = vpop.permute.xlu0 %2071 }
0x17e8   :  { %3628 = vpow2.f32 %v2057_v18  ;;  %v2077_v22 = vsel %vm347_vm5, %v2072_v21, 0  ;;  %3414 = vmatprep.subr.bf16.mxu0 %v3678_v2 }
0x17e9   :  { %3397 = vmatpush3.bf16.msra.mxu1 %v2077_v22 }
0x17ea   :  { %3408 = vmatprep.subr.bf16.mxu1 %v3678_v2 }
0x17f0   :  { %v3627_v24 = vpop.eup %3626 }
0x17f1   :  { %v2059_v25 = vsel %vm222_vm3, %v3627_v24, 0.0 }
0x17f2   :  { %v3629_v27 = vpop.eup %3628  ;;  %2060 = vadd.xlane.f32.xlu0 %v2059_v25 }
0x17f3   :  { %v2062_v28 = vsel %vm222_vm3, %v3629_v27, 0.0 }
0x17f4   :  { %2063 = vadd.xlane.f32.xlu1 %v2062_v28 }
0x1805   :  { %2169 = vrot.lane.b32.xlu1 %v4129_v58, %s3689_s28 }
0x1808   :  { %2219 = vrot.lane.b32.xlu0 %v4131_v61, %s3689_s28 }
0x1809   :  { %2167 = vrot.lane.b32.xlu1 %v4129_v58, %s3690_s29 }
0x180c   :  { %2217 = vrot.lane.b32.xlu0 %v4131_v61, %s3690_s29 }
0x187f   :  { %v2061_v29 = vpop.xlane.xlu0 %2060 }
0x1880   :  { %3630 = vrcp.f32 %v2061_v29 }
0x1881   :  { %v2064_v30 = vpop.xlane.xlu1 %2063 }
0x1882   :  { %3632 = vrcp.f32 %v2064_v30 }
0x1883   :  { %v2220_v4 = vpop.permute.xlu0 %2219 }
0x1884   :  { %v2225_v8 = vsel %vm222_vm3, %v2220_v4, 0 }
0x1885   :  { %v2170_v36 = vpop.permute.xlu1 %2169 }
0x1886   :  { %v2175_v15 = vsel %vm222_vm3, %v2170_v36, 0 }
0x1887   :  { %v2218_v38 = vpop.permute.xlu0 %2217 }
0x1889   :  { %v2168_v9 = vpop.permute.xlu1 %2167 }
0x188a   :  { %v3631_v31 = vpop.eup %3630 }
0x188b   :  { %v2067_v33 = vmul.f32 %v3631_v31, %v3627_v24 }
0x188c   :  { %v3633_v34 = vpop.eup %3632 }
0x188d   :  { %v2068_v23 = vmul.f32 %v3633_v34, %v3629_v27  ;;  %v2069_v37 = vpack.c.bf16 %v2067_v33, %v2067_v33  ;;  %v3552_v33 = vld [vmem:[%s4452_s6 + $0x10] sm:$0xff]   ;;  %v3553_v34 = vld [vmem:[%s4452_s6 + $0x18] sm:$0xff]  }
0x188f   :  { %3399 = vmatmul.mubr.msk.bf16.vlgmr.msra.gmra.mrb[68].mxu1 %vm222_vm3, %v2069_v37  ;;  %v2070_v16 = vpack.c.bf16 %v2068_v23, %v2068_v23 }
0x1890   :  { %3409 = vmatpush3.bf16.xpose.msra.mxu1 %v2175_v15  ;;  %3410 = vmatprep.mubr.msk.bf16.mxu1 %vm3679_vm0, %v3678_v2 }
0x1891   :  { %3405 = vmatmul.mubr.msk.bf16.vlgmr.msra.gmra.mrb[60].mxu0 %vm222_vm3, %v2070_v16  ;;  %3420 = vmatprep.subr.bf16.mxu1 %v3678_v2 }
0x1892   :  { %3415 = vmatpush3.bf16.xpose.msra.mxu0 %v2225_v8  ;;  %3416 = vmatprep.mubr.msk.bf16.mxu0 %vm3679_vm0, %v3678_v2 }
0x1893   :  { %3426 = vmatprep.subr.bf16.mxu0 %v3678_v2 }
0x1897   :  { %3411 = vmatmul.mubr.msk.bf16.vlgmr.msra.gmra.mrb[72].mxu1 %vm222_vm3, %v2168_v9 }
0x1898   :  { %3422 = vmatprep.mubr.msk.bf16.mxu1 %vm3679_vm0, %v3678_v2 }
0x1899   :  { %3417 = vmatmul.mubr.msk.bf16.vlgmr.msra.gmra.mrb[64].mxu0 %vm222_vm3, %v2218_v38 }
0x189a   :  { %3428 = vmatprep.mubr.msk.bf16.mxu0 %vm3679_vm0, %v3678_v2 }
0x1962   :  { %v2113_v40 = vpop.f32.mrb[68].mxu1 }
0x1963   :  { %v3400_v42 = vpop.f32.mrb[69].mxu1 }
0x1964   :  { %v2116_v26 = vpop.f32.mrb[70].mxu1  ;;  %v2161_v47 = vpop.f32.mrb[60].mxu0 }
0x1965   :  { %v3527_v53 = vpack.i.bf16 %v2161_v47, %v2113_v40  ;;  %v3401_v54 = vpop.f32.mrb[71].mxu1  ;;  %v3406_v56 = vpop.f32.mrb[61].mxu0 }
0x1966   :  { %v2164_v44 = vpop.f32.mrb[62].mxu0 }
0x1967   :  { %v3407_v57 = vpop.f32.mrb[63].mxu0 }
0x196a   :  { %v2211_v59 = vpop.f32.mrb[72].mxu1 }
0x196b   :  { %v2212_v60 = vadd.f32 %v2211_v59, %v3868_v35  ;;  %v3412_v62 = vpop.f32.mrb[73].mxu1 }
0x196c   :  { %v2214_v63 = vpop.f32.mrb[74].mxu1  ;;  %v2261_v0 = vpop.f32.mrb[64].mxu0 }
0x196d   :  { %v2262_v1 = vadd.f32 %v2261_v0, %v3868_v35  ;;  %v3413_v3 = vpop.f32.mrb[75].mxu1  ;;  %v3418_v5 = vpop.f32.mrb[65].mxu0  ;;  %v2267_v6 = vsel %vm222_vm3, %v2212_v60, -inf }
0x196e   :  { %2268 = vmax.xlane.f32.xlu1 %v2267_v6  ;;  %v2264_v7 = vpop.f32.mrb[66].mxu0 }
0x196f   :  { %v3419_v10 = vpop.f32.mrb[67].mxu0  ;;  %v2270_v11 = vsel %vm222_vm3, %v2262_v1, -inf }
0x1970   :  { %2271 = vmax.xlane.f32.xlu0 %v2270_v11 }
0x19fb   :  { %v2269_v12 = vpop.xlane.xlu1 %2268 }
0x19fc   :  { %v2273_v14 = vsub.f32 %v2212_v60, %v2269_v12 }
0x19fd   :  { %v2272_v13 = vpop.xlane.xlu0 %2271 }
0x19fe   :  { %v2275_v19 = vmul.f32 1.442695, %v2273_v14  ;;  %v2274_v17 = vsub.f32 %v2262_v1, %v2272_v13 }
0x1a00   :  { %3634 = vpow2.f32 %v2275_v19  ;;  %v2277_v18 = vmul.f32 1.442695, %v2274_v17 }
0x1a02   :  { %3636 = vpow2.f32 %v2277_v18 }
0x1a0a   :  { %v3635_v20 = vpop.eup %3634 }
0x1a0b   :  { %v2279_v35 = vsel %vm222_vm3, %v3635_v20, 0.0 }
0x1a0c   :  { %v3637_v21 = vpop.eup %3636  ;;  %2280 = vadd.xlane.f32.xlu0 %v2279_v35 }
0x1a0d   :  { %v2282_v22 = vsel %vm222_vm3, %v3637_v21, 0.0 }
0x1a0e   :  { %2283 = vadd.xlane.f32.xlu1 %v2282_v22 }
0x1a1f   :  { %2339 = vrot.lane.b32.xlu1 %v4131_v61, %s4480_s5 }
0x1a22   :  { %2291 = vrot.lane.b32.xlu0 %v4129_v58, %s4480_s5 }
0x1a23   :  { %3523 = vrot.lane.b32.xlu1 %v3522_v49, %s4481_s2 }
0x1a26   :  { %3528 = vrot.lane.b32.xlu0 %v3527_v53, %s4482_s23 }
0x1a99   :  { %v2281_v24 = vpop.xlane.xlu0 %2280 }
0x1a9a   :  { %3638 = vrcp.f32 %v2281_v24 }
0x1a9b   :  { %v2284_v25 = vpop.xlane.xlu1 %2283 }
0x1a9c   :  { %3640 = vrcp.f32 %v2284_v25 }
0x1a9d   :  { %v2292_v27 = vpop.permute.xlu0 %2291 }
0x1a9e   :  { %v2297_v28 = vsel %vm347_vm5, %v2292_v27, 0 }
0x1a9f   :  { %v2340_v29 = vpop.permute.xlu1 %2339  ;;  %3421 = vmatpush3.bf16.msra.mxu1 %v2297_v28  ;;  %v3555_v28 = vld [vmem:[%s4455_s9 + $0x18] sm:$0xff]  }
0x1aa0   :  { %v2345_v61 = vsel %vm347_vm5, %v2340_v29, 0  ;;  %3432 = vmatprep.subr.bf16.mxu1 %v3678_v2  ;;  %v3556_v29 = vld [vmem:[%s4457_s11 + $0x20] sm:$0xff]  }
0x1aa1   :  { %3427 = vmatpush3.bf16.msra.mxu0 %v2345_v61  ;;  %v3529_v47 = vpop.permute.xlu0 %3528  ;;  %v3557_v61 = vld [vmem:[%s4457_s11 + $0x28] sm:$0xff]  }
0x1aa2   :  { %3440 = vmatprep.subr.bf16.mxu0 %v3678_v2  ;;  %v3531_v56 = vunpack.i.h.bf16 %v3529_v47  ;;  %v3530_v44 = vunpack.i.l.bf16 %v3529_v47 }
0x1aa3   :  { %v3524_v40 = vpop.permute.xlu1 %3523 }
0x1aa4   :  { %v3639_v58 = vpop.eup %3638  ;;  %v3526_v42 = vunpack.i.h.bf16 %v3524_v40  ;;  %v3525_v26 = vunpack.i.l.bf16 %v3524_v40 }
0x1aa5   :  { %v2287_v45 = vmul.f32 %v3639_v58, %v3635_v20 }
0x1aa6   :  { %v3641_v48 = vpop.eup %3640  ;;  %v2412_v53 = vsel %vm222_vm3, %v4189_v55, %v3526_v42  ;;  %v2411_v54 = vsel %vm222_vm3, %v4187_v50, %v3525_v26  ;;  %v3041_v50 = vld [vmem:[%s4453_s7 + $0x1] ss:$0 sm:$0xff] }
0x1aa7   :  { %v2288_v49 = vmul.f32 %v3641_v48, %v3637_v21  ;;  %v2289_v30 = vpack.c.bf16 %v2287_v45, %v2287_v45  ;;  %v2413_v62 = vsel %vm88_vm1, %v2411_v54, %v3530_v44  ;;  %v2414_v63 = vsel %vm88_vm1, %v2412_v53, %v3531_v56  ;;  %v3050_v42 = vld [vmem:[%s4456_s10 + $0x1] ss:$0 sm:$0xff] }
0x1aa9   :  { %3423 = vmatmul.mubr.msk.bf16.vlgmr.msra.gmra.mrb[76].mxu1 %vm222_vm3, %v2289_v30  ;;  %v2290_v31 = vpack.c.bf16 %v2288_v49, %v2288_v49 }
0x1aaa   :  { %3436 = vmatprep.mubr.msk.bf16.mxu1 %vm3679_vm0, %v3678_v2  ;;  %3433 = vmatpush3.bf16.msra.mxu1 %v3552_v33  ;;  %v4346_v33 = vld [vmem:[%s4454_s8 + $0x4] sm:$0xf] }
0x1aab   :  { %3429 = vmatmul.mubr.msk.bf16.vlgmr.msra.gmra.mrb[68].mxu0 %vm222_vm3, %v2290_v31  ;;  %3434 = vmatprep.subr.bf16.mxu1 %v3678_v2 }
0x1aac   :  { %3444 = vmatprep.mubr.msk.bf16.mxu0 %vm3679_vm0, %v3678_v2 }
0x1aae   :  { %3435 = vmatpush3.bf16.msra.mxu1 %v3553_v34 }
0x1aaf   :  { %3448 = vmatprep.subr.bf16.mxu1 %v3678_v2 }
0x1b7c   :  { %v2333_v36 = vpop.f32.mrb[76].mxu1 }
0x1b7d   :  { %v3424_v23 = vpop.f32.mrb[77].mxu1 }
0x1b7e   :  { %v2336_v37 = vpop.f32.mrb[78].mxu1  ;;  %v2381_v4 = vpop.f32.mrb[68].mxu0 }
0x1b7f   :  { %v3532_v15 = vpack.i.bf16 %v2381_v4, %v2333_v36  ;;  %v3425_v16 = vpop.f32.mrb[79].mxu1  ;;  %v3430_v8 = vpop.f32.mrb[69].mxu0  ;;  %v2513_v36 = vrot.slane %v4346_v33, %v1225_v43  ;;  %v3558_v43 = vld [vmem:[%s4457_s11 + $0x30] sm:$0xff]  }
0x1b80   :  { %v2384_v9 = vpop.f32.mrb[70].mxu0  ;;  %v2519_v16 = vrot.slane %v4346_v33, %v1231_v46  ;;  %v3559_v46 = vld [vmem:[%s4457_s11 + $0x38] sm:$0xff]  }
0x1b81   :  { %3533 = vrot.lane.b32.xlu1 %v3532_v15, %s4483_s26  ;;  %v3431_v38 = vpop.f32.mrb[71].mxu0 }
0x1bf3   :  { %v3534_v57 = vpop.permute.xlu1 %3533 }
0x1bf4   :  { %v3536_v59 = vunpack.i.h.bf16 %v3534_v57  ;;  %v3535_v60 = vunpack.i.l.bf16 %v3534_v57 }
0x1bf6   :  { %v2416_v0 = vsel %vm1127_vm6, %v2414_v63, %v3536_v59  ;;  %v2415_v1 = vsel %vm1127_vm6, %v2413_v62, %v3535_v60  ;;  %v3063_v62 = vld [vmem:[%s4458_s12 + $0x1] ss:$0 sm:$0xff] }
0x1bf7   :  { %v2417_v3 = vpack.c.bf16 %v2416_v0, %v2415_v1 }
0x1bf9   :  { %3437 = vmatmul.mubr.msk.bf16.vlgmr.msra.gmra.mrb[80].mxu1 %vm172_vm2, %v2417_v3 }
0x1bfa   :  { %3456 = vmatprep.mubr.msk.bf16.mxu1 %vm3679_vm0, %v3678_v2  ;;  %3449 = vmatpush3.bf16.msra.mxu1 %v3556_v29 }
0x1bfb   :  { %3450 = vmatprep.subr.bf16.mxu1 %v3678_v2 }
0x1bfe   :  { %3451 = vmatpush3.bf16.msra.mxu1 %v3557_v61  ;;  %v2711_v61 = vrot.slane %v4346_v33, %v1420_v39 }
0x1bff   :  { %3452 = vmatprep.subr.bf16.mxu1 %v3678_v2 }
0x1c02   :  { %3453 = vmatpush3.bf16.msra.mxu1 %v3558_v43 }
0x1c03   :  { %3454 = vmatprep.subr.bf16.mxu1 %v3678_v2 }
0x1c06   :  { %3455 = vmatpush3.bf16.msra.mxu1 %v3559_v46 }
0x1ccc   :  { %v2475_v55 = vpop.f32.mrb[80].mxu1 }
0x1ccd   :  { %v2476_v5 = vadd.f32 %v3041_v50, %v2475_v55  ;;  %v3438_v6 = vpop.f32.mrb[81].mxu1 }
0x1cce   :  { %v2478_v7 = vpop.f32.mrb[82].mxu1 }
0x1ccf   :  { %v2479_v10 = vadd.f32 %v3041_v50, %v2478_v7  ;;  %v3439_v11 = vpop.f32.mrb[83].mxu1  ;;  %v2482_v12 = vadd.f32 %v2476_v5, %v4117_v51 }
0x1cd1   :  { %v2483_v14 = vadd.f32 %v2479_v10, %v4119_v52  ;;  %v2484_v13 = vsel %vm172_vm2, %v2482_v12, 0.0  ;;  %v3554_v52 = vld [vmem:[%s4455_s9 + $0x10] sm:$0xff]  }
0x1cd2   :  { %2485 = vadd.xlane.f32.xlu0 %v2484_v13  ;;  %3441 = vmatpush3.bf16.msra.mxu0 %v3554_v52 }
0x1cd3   :  { %v2487_v19 = vsel %vm172_vm2, %v2483_v14, 0.0  ;;  %3442 = vmatprep.subr.bf16.mxu0 %v3678_v2 }
0x1cd4   :  { %2488 = vadd.xlane.f32.xlu1 %v2487_v19 }
0x1cd6   :  { %3443 = vmatpush3.bf16.msra.mxu0 %v3555_v28 }
0x1cd7   :  { %3460 = vmatprep.subr.bf16.mxu0 %v3678_v2 }
0x1d5f   :  { %v2486_v17 = vpop.xlane.xlu0 %2485 }
0x1d60   :  { %v2490_v18 = vmul.f32 0.03125, %v2486_v17 }
0x1d61   :  { %v2489_v20 = vpop.xlane.xlu1 %2488 }
0x1d62   :  { %v2492_v35 = vsub.f32 %v2482_v12, %v2490_v18  ;;  %v2491_v21 = vmul.f32 0.03125, %v2489_v20 }
0x1d64   :  { %v2493_v22 = vsub.f32 %v2483_v14, %v2491_v21  ;;  %v2494_v24 = vmul.f32 %v2492_v35, %v2492_v35 }
0x1d66   :  { %v2496_v25 = vsel %vm172_vm2, %v2494_v24, 0.0  ;;  %v2495_v27 = vmul.f32 %v2493_v22, %v2493_v22  ;;  %v3561_v24 = vld [vmem:[%s4459_s13 + $0x8] sm:$0xff]  }
0x1d67   :  { %2497 = vadd.xlane.f32.xlu0 %v2496_v25 }
0x1d68   :  { %v2499_v51 = vsel %vm172_vm2, %v2495_v27, 0.0 }
0x1d6b   :  { %2500 = vadd.xlane.f32.xlu0 %v2499_v51 }
0x1df4   :  { %v2498_v58 = vpop.xlane.xlu0 %2497 }
0x1df5   :  { %v2502_v45 = vmul.f32 0.03125, %v2498_v58 }
0x1df7   :  { %v2504_v48 = vadd.f32 1e-05, %v2502_v45  ;;  %v2717_v45 = vrot.slane %v4346_v33, %v1426_v41 }
0x1df8   :  { %v2501_v49 = vpop.xlane.xlu0 %2500 }
0x1df9   :  { %3642 = vrsqrt.f32 %v2504_v48  ;;  %v2503_v30 = vmul.f32 0.03125, %v2501_v49 }
0x1dfb   :  { %v2505_v31 = vadd.f32 1e-05, %v2503_v30 }
0x1dfd   :  { %3644 = vrsqrt.f32 %v2505_v31 }
0x1e03   :  { %v3643_v34 = vpop.eup %3642 }
0x1e04   :  { %v2508_v23 = vmul.f32 %v3643_v34, %v2492_v35 }
0x1e06   :  { %v2514_v4 = vmul.f32 %v2513_v36, %v2508_v23 }
0x1e07   :  { %v3645_v37 = vpop.eup %3644 }
0x1e08   :  { %v2509_v15 = vmul.f32 %v3645_v37, %v2493_v22  ;;  %v2520_v9 = vadd.f32 %v2519_v16, %v2514_v4  ;;  %v3560_v22 = vld [vmem:[%s4459_s13] sm:$0xff]  }
0x1e0a   :  { %v2515_v8 = vmul.f32 %v2513_v36, %v2509_v15 }
0x1e0c   :  { %v2521_v38 = vadd.f32 %v2519_v16, %v2515_v8 }
0x1e0e   :  { %v2522_v40 = vpack.c.bf16 %v2521_v38, %v2520_v9 }
0x1e10   :  { %3445 = vmatmul.mubr.msk.bf16.vlgmr.msra.gmra.mrb[72].mxu0 %vm172_vm2, %v2522_v40 }
0x1e11   :  { %3464 = vmatprep.mubr.msk.bf16.mxu0 %vm3679_vm0, %v3678_v2  ;;  %3461 = vmatpush3.bf16.msra.mxu0 %v3560_v22 }
0x1e12   :  { %3462 = vmatprep.subr.bf16.mxu0 %v3678_v2 }
0x1e15   :  { %3463 = vmatpush3.bf16.msra.mxu0 %v3561_v24 }
0x1e16   :  { %3468 = vmatprep.subr.bf16.mxu0 %v3678_v2 }
0x1ee3   :  { %v2585_v26 = vpop.f32.mrb[72].mxu0 }
0x1ee4   :  { %v2586_v47 = vadd.f32 %v3050_v42, %v2585_v26  ;;  %v3446_v53 = vpop.f32.mrb[73].mxu0 }
0x1ee5   :  { %v2588_v54 = vpop.f32.mrb[74].mxu0 }
0x1ee6   :  { %v2589_v56 = vadd.f32 %v3050_v42, %v2588_v54  ;;  %v3447_v44 = vpop.f32.mrb[75].mxu0  ;;  %v2592_v57 = vmax.f32 %v2586_v47, 0.0 }
0x1ee8   :  { %v2593_v59 = vmax.f32 %v2589_v56, 0.0 }
0x1eea   :  { %v2594_v60 = vpack.c.bf16 %v2593_v59, %v2592_v57  ;;  %v3562_v57 = vld [vmem:[%s4461_s15] sm:$0xff]  }
0x1eec   :  { %3457 = vmatmul.mubr.msk.bf16.vlgmr.msra.gmra.mrb[84].mxu1 %vm1345_vm7, %v2594_v60  ;;  %v3563_v60 = vld [vmem:[%s4461_s15 + $0x8] sm:$0xff]  }
0x1fbf   :  { %v2673_v63 = vpop.f32.mrb[84].mxu1 }
0x1fc0   :  { %v2674_v0 = vadd.f32 %v3063_v62, %v2673_v63  ;;  %v3458_v1 = vpop.f32.mrb[85].mxu1  ;;  %v3565_v63 = vld [vmem:[%s4461_s15 + $0x18] sm:$0xff]  }
0x1fc1   :  { %v2676_v3 = vpop.f32.mrb[86].mxu1  ;;  %v3567_v1 = vld [vmem:[%s4461_s15 + $0x28] sm:$0xff]  }
0x1fc2   :  { %v2680_v50 = vadd.f32 %v2674_v0, %v2520_v9  ;;  %v2677_v55 = vadd.f32 %v3063_v62, %v2676_v3  ;;  %v3459_v5 = vpop.f32.mrb[87].mxu1  ;;  %v3564_v62 = vld [vmem:[%s4461_s15 + $0x10] sm:$0xff]   ;;  %v3566_v0 = vld [vmem:[%s4461_s15 + $0x20] sm:$0xff]  }
0x1fc3   :  { %v3568_v3 = vld [vmem:[%s4461_s15 + $0x30] sm:$0xff]  }
0x1fc4   :  { %v2682_v6 = vsel %vm172_vm2, %v2680_v50, 0.0  ;;  %v2681_v7 = vadd.f32 %v2677_v55, %v2521_v38  ;;  %v3069_v55 = vld [vmem:[%s4460_s14] ss:$0 sm:$0xff]  ;;  %s3696_s14 = smov [#allocation3]  }
0x1fc5   :  { %2683 = vadd.xlane.f32.xlu1 %v2682_v6 }
0x1fc6   :  { %v2685_v10 = vsel %vm172_vm2, %v2681_v7, 0.0 }
0x1fc7   :  { %2686 = vadd.xlane.f32.xlu0 %v2685_v10 }
0x2052   :  { %v2684_v11 = vpop.xlane.xlu1 %2683 }
0x2053   :  { %v2688_v12 = vmul.f32 0.03125, %v2684_v11 }
0x2054   :  { %v2687_v14 = vpop.xlane.xlu0 %2686 }
0x2055   :  { %v2690_v13 = vsub.f32 %v2680_v50, %v2688_v12  ;;  %v2689_v19 = vmul.f32 0.03125, %v2687_v14  ;;  %v3569_v50 = vld [vmem:[%s4461_s15 + $0x38] sm:$0xff]  }
0x2057   :  { %v2691_v17 = vsub.f32 %v2681_v7, %v2689_v19  ;;  %v2692_v18 = vmul.f32 %v2690_v13, %v2690_v13 }
0x2059   :  { %v2694_v20 = vsel %vm172_vm2, %v2692_v18, 0.0  ;;  %v2693_v35 = vmul.f32 %v2691_v17, %v2691_v17  ;;  %v3082_v18 = vld [vmem:[%s4463_s17] ss:$0 sm:$0xff] }
0x205a   :  { %2695 = vadd.xlane.f32.xlu1 %v2694_v20 }
0x205b   :  { %v2697_v21 = vsel %vm172_vm2, %v2693_v35, 0.0 }
0x205c   :  { %2698 = vadd.xlane.f32.xlu0 %v2697_v21 }
0x20e7   :  { %v2696_v25 = vpop.xlane.xlu1 %2695 }
0x20e8   :  { %v2700_v27 = vmul.f32 0.03125, %v2696_v25  ;;  %v3695_v25 = vmov 0  }
0x20e9   :  { %v2699_v51 = vpop.xlane.xlu0 %2698  ;;  %3537 = vset.pattern.permute.xlu0 %v3695_v25 }
0x20ea   :  { %v2702_v52 = vadd.f32 1e-05, %v2700_v27  ;;  %v2701_v28 = vmul.f32 0.03125, %v2699_v51  ;;  %v3083_v27 = vld [vmem:[#allocation2] ss:$0 sm:$0xff] }
0x20ec   :  { %3646 = vrsqrt.f32 %v2702_v52  ;;  %v2703_v29 = vadd.f32 1e-05, %v2701_v28 }
0x20ee   :  { %3648 = vrsqrt.f32 %v2703_v29 }
0x20f6   :  { %v3647_v58 = vpop.eup %3646 }
0x20f7   :  { %v2706_v48 = vmul.f32 %v3647_v58, %v2690_v13 }
0x20f8   :  { %v3649_v49 = vpop.eup %3648 }
0x20f9   :  { %v2712_v30 = vmul.f32 %v2711_v61, %v2706_v48  ;;  %v2707_v31 = vmul.f32 %v3649_v49, %v2691_v17 }
0x20fb   :  { %v2718_v34 = vadd.f32 %v2717_v45, %v2712_v30  ;;  %v2713_v36 = vmul.f32 %v2711_v61, %v2707_v31 }
0x20fd   :  { %v2720_v23 = vsel %vm172_vm2, %v2718_v34, 0.0  ;;  %v2719_v37 = vadd.f32 %v2717_v45, %v2713_v36 }
0x20fe   :  { %v2721_v4 = vrot.slane %v2720_v23, 4 }
0x20ff   :  { %v2727_v15 = vsel %vm172_vm2, %v2719_v37, 0.0 }
0x2100   :  { %v2722_v16 = vadd.f32 %v2721_v4, %v2720_v23  ;;  %v2728_v8 = vrot.slane %v2727_v15, 4 }
0x2102   :  { %v2723_v39 = vrot.slane %v2722_v16, 2  ;;  %v2729_v9 = vadd.f32 %v2728_v8, %v2727_v15 }
0x2104   :  { %v2730_v38 = vrot.slane %v2729_v9, 2  ;;  %v2724_v32 = vadd.f32 %v2723_v39, %v2722_v16 }
0x2106   :  { %v2725_v40 = vrot.slane %v2724_v32, 1  ;;  %v2731_v41 = vadd.f32 %v2730_v38, %v2729_v9 }
0x2108   :  { %v2726_v33 = vadd.f32 %v2725_v40, %v2724_v32  ;;  %v2732_v43 = vrot.slane %v2731_v41, 1 }
0x210a   :  { %v2733_v46 = vadd.f32 %v2732_v43, %v2731_v41  ;;  %v2735_v42 = vmul.f32 0.125, %v2726_v33 }
0x210c   :  { %v2736_v26 = vmul.f32 0.125, %v2733_v46  ;;  %v2737_v47 = vpack.c.bf16 %v2735_v42, %v2735_v42 }
0x210e   :  { %v2738_v53 = vpack.c.bf16 %v2736_v26, %v2736_v26  ;;  %v2752_v54 = vunpack.c.l.b16 %v2737_v47 }
0x2110   :  { %v2753_v56 = vunpack.c.l.b16 %v2738_v53 }
0x2112   :  { %v2755_v44 = vsel %vm2754_vm8, %v2753_v56, %v2752_v54 }
0x2113   :  { %v2756_v59 = vpack.c.b16 %v2755_v44, %v2755_v44 }
0x2115   :  { %3465 = vmatmul.mubr.msk.bf16.vlgmr.msra.gmra.mrb[76].mxu0 %vm172_vm2, %v2756_v59 }
0x2116   :  { %3469 = vmatpush3.bf16.msra.mxu0 %v3562_v57  ;;  %3484 = vmatprep.mubr.msk.bf16.mxu0 %vm3679_vm0, %v3678_v2 }
0x2117   :  { %3470 = vmatprep.subr.bf16.mxu0 %v3678_v2 }
0x211a   :  { %3471 = vmatpush3.bf16.msra.mxu0 %v3563_v60 }
0x211b   :  { %3472 = vmatprep.subr.bf16.mxu0 %v3678_v2 }
0x211e   :  { %3473 = vmatpush3.bf16.msra.mxu0 %v3564_v62 }
0x211f   :  { %3474 = vmatprep.subr.bf16.mxu0 %v3678_v2 }
0x2122   :  { %3475 = vmatpush3.bf16.msra.mxu0 %v3565_v63 }
0x2123   :  { %3476 = vmatprep.subr.bf16.mxu0 %v3678_v2 }
0x2126   :  { %3477 = vmatpush3.bf16.msra.mxu0 %v3566_v0 }
0x2127   :  { %3478 = vmatprep.subr.bf16.mxu0 %v3678_v2 }
0x212a   :  { %3479 = vmatpush3.bf16.msra.mxu0 %v3567_v1 }
0x212b   :  { %3480 = vmatprep.subr.bf16.mxu0 %v3678_v2 }
0x212e   :  { %3481 = vmatpush3.bf16.msra.mxu0 %v3568_v3 }
0x212f   :  { %3482 = vmatprep.subr.bf16.mxu0 %v3678_v2  ;;  %v3073_v2 = vld [vmem:[%s4462_s16] ss:$0 sm:$0xff]  ;;  %s2964_s16 = sshll.u32 %s3696_s14, 4  ;;  %s2965_s16 = int_to_ptr.vmem [resolvable:$true] %s2964_s16 }
0x2130   :  { %s3654_s17 = scalar_lea.vmem %s2965_s16, 32  ;;  %p3659_p1 = scmp.lt.s32.totalorder %s2965_s16, %s2965_s16 }
0x2131   :  { %p3655_p0 = scmp.ne.s32.totalorder %s2965_s16, %s3654_s17  ;;  %p3660_p2 = scmp.lt.s32.totalorder %s3654_s17, %s3654_s17 }
0x2132   :  { %3483 = vmatpush3.bf16.msra.mxu0 %v3569_v50 }
0x2133   :  { %p3661_p3 = por %p3660_p2, %p3659_p1 }
0x2135   :  { %p3662_p4 = pnand %p3661_p3, %p3655_p0 }
0x21e8   :  { %v2806_v5 = vpop.f32.mrb[76].mxu0 }
0x21e9   :  { %v2807_v6 = vadd.f32 %v3069_v55, %v2806_v5  ;;  %v3466_v7 = vpop.f32.mrb[77].mxu0 }
0x21ea   :  { %v2809_v10 = vpop.f32.mrb[78].mxu0 }
0x21eb   :  { %v2812_v11 = vmax.f32 %v2807_v6, 0.0  ;;  %v3467_v12 = vpop.f32.mrb[79].mxu0 }
0x21ed   :  { %v2813_v14 = vpack.c.bf16 %v2812_v11, %v2812_v11 }
0x21ef   :  { %3485 = vmatmul.mubr.bf16.vlgmr.msra.gmra.mrb[80].mxu0 %v2813_v14 }
0x22c2   :  { %v2919_v13 = vpop.f32.mrb[80].mxu0 }
0x22c3   :  { %v2920_v19 = vadd.f32 %v3073_v2, %v2919_v13  ;;  %v3486_v17 = vpop.f32.mrb[81].mxu0 }
0x22c4   :  { %v2922_v20 = vpop.f32.mrb[82].mxu0 }
0x22c5   :  { %v2925_v35 = vmax.f32 %v2920_v19, 0.0  ;;  %v3487_v21 = vpop.f32.mrb[83].mxu0 }
0x22c7   :  { %v2933_v22 = vmul.f32 %v3082_v18, %v2925_v35 }
0x22c9   :  { %v2935_v24 = vsel %vm2934_vm9, %v2933_v22, 0.0 }
0x22ca   :  { %2936 = vadd.xlane.f32.xlu1 %v2935_v24 }
0x2357   :  { %v2937_v51 = vpop.xlane.xlu1 %2936 }
0x2358   :  { %v2945_v52 = vadd.f32 %v3083_v27, %v2937_v51 }
0x235a   :  { %v2946_v28 = vsub.f32 0.0, %v2945_v52 }
0x235c   :  { %v2947_v29 = vmul.f32 1.442695, %v2946_v28 }
0x235e   :  { %3650 = vpow2.f32 %v2947_v29 }
0x2368   :  { %v3651_v61 = vpop.eup %3650 }
0x2369   :  { %v2949_v58 = vadd.f32 1.0, %v3651_v61 }
0x236b   :  { %3652 = vrcp.f32 %v2949_v58 }
0x2375   :  { %v3653_v45 = vpop.eup %3652 }
0x2376   :  { %2954 = vperm.xlu0 %3537, %v3653_v45  }
0x23f5   :  { %v2955_v48 = vpop.permute.xlu0 %2954 }
0x23f6   :  { %2957 = vst [vmem:[#allocation3] sm:$0x3] %v2955_v48 }
0x23f7   :  { %3665 = shalt.err (!%p3662_p4)
}
0x23f8   :  { %s3666_s11 = scalar_lea.hbm %s4465_s19, 32 }
0x23f9   :  { %p3667_p5 = scmp.ne.s32.totalorder %s4465_s19, %s3666_s11  ;;  %p3670_p6 = scmp.lt.u32.totalorder %s3666_s11, %s4465_s19 }
0x23fb   :  { %p3672_p7 = pnand %p3670_p6, %p3667_p5 }
0x23fd   :  { %3675 = shalt.err (!%p3672_p7)
}
0x23fe   :  { %2967 = dma.vmem_to_hbm [thread:$0]  %s2965_s16, 32, %s4465_s19, [#allocation4]  }
0x23ff   :  { %3676 = dma.done.wait [#allocation4], 32  }
0x2400   :  { %3677 = vsyncadd [#allocation4], 4294967264 }
0x2401   :  { %2971 = vsyncpa [#allocation4], 1 }

</bundles_post_ra>
